<compile_context>
chip_gen: v7x
topology: tpu7x:2x2x1
jax: 0.10.0
libtpu: 0.0.40
codegen_flags: <defaults>
</compile_context>

<pallas_src>
import functools

import jax
import jax.numpy as jnp
from jax.experimental import pallas as pl
from jax.experimental.pallas import tpu as pltpu


# ----------------------------------------------------------------------------
# Fused kernel: shared UniBasis recursion + 5 Combination views + 2 InfoNCE
# ----------------------------------------------------------------------------
def _fused_head_kernel(hom0_ref, w0_ref, homk_ref, wk_ref, p_ref, x_ref,
                       z_ref, loss_ref,
                       v_ref, vnew_ref, vb_ref, acc_ref,
                       *, h_hats, tau, inv_temp):
    k = pl.program_id(0)            # level step: this step builds v_{k+1}
    r = pl.program_id(1)            # row tile of P being streamed
    n_levels = pl.num_programs(0)   # == K
    n_tiles = pl.num_programs(1)

    N, F = x_ref.shape
    TM = p_ref.shape[0]

    # ---- first grid step: v_0 = X / ||X||_F and level-0 term of all 5 views ----
    @pl.when((k == 0) & (r == 0))
    def _init():
        x = x_ref[...]
        v0 = x * jax.lax.rsqrt(jnp.sum(x * x) + 1e-12)
        v_ref[...] = v0
        vb_ref[...] = v0.astype(vb_ref.dtype)
        hom0 = hom0_ref[...]
        w0 = w0_ref[...]
        for vi in range(5):
            h = h_hats[vi]
            acc_ref[vi] = w0[vi:vi + 1, :] * (h * hom0 + (1.0 - h) * v0)

    # ---- every step: one [TM, N] row slab of P against the resident v_k (MXU) ----
    row0 = pl.multiple_of(r * TM, TM)
    vnew_ref[pl.ds(row0, TM), :] = jnp.dot(
        p_ref[...], vb_ref[...], preferred_element_type=jnp.float32)

    # ---- last row tile of this level: finalize v_{k+1}, fold level k+1 into views ----
    @pl.when(r == n_tiles - 1)
    def _finalize():
        v = v_ref[...]
        vnew = vnew_ref[...]
        proj = jnp.sum(vnew * v)                     # tau-weighted orthogonalization
        vnew = vnew - tau * proj * v
        vnext = vnew * jax.lax.rsqrt(jnp.sum(vnew * vnew) + 1e-12)
        v_ref[...] = vnext
        vb_ref[...] = vnext.astype(vb_ref.dtype)
        homk = homk_ref[0]                           # homophily basis, level k+1
        wk = wk_ref[0]                               # [5, F] Combination weights, level k+1
        for vi in range(5):
            h = h_hats[vi]
            acc_ref[vi] = acc_ref[vi] + wk[vi:vi + 1, :] * (h * homk + (1.0 - h) * vnext)

    # ---- very last grid step: emit [z1 | z2] and the two InfoNCE losses ----
    @pl.when((k == n_levels - 1) & (r == n_tiles - 1))
    def _emit():
        z1, z1p, z2, z2p, za = (acc_ref[0], acc_ref[1], acc_ref[2],
                                acc_ref[3], acc_ref[4])
        z_ref[:, 0:F] = z1
        z_ref[:, F:2 * F] = z2

        def infonce(q, keys):
            # logits = [q.pos, q.n1, q.n2, q.n3] / temperature, label 0 ->
            # mean_n( logsumexp(logits_n) - logits_n[0] )
            l = [jnp.sum(q * kk, axis=-1, keepdims=True) * inv_temp for kk in keys]
            m = jnp.maximum(jnp.maximum(l[0], l[1]), jnp.maximum(l[2], l[3]))
            lse = m + jnp.log(jnp.exp(l[0] - m) + jnp.exp(l[1] - m)
                              + jnp.exp(l[2] - m) + jnp.exp(l[3] - m))
            return jnp.sum(lse - l[0], axis=0, keepdims=True) * (1.0 / N)

        loss_ref[...] = (infonce(z1, (z1p, z2, z2p, za))
                         + infonce(z2, (z2p, z1, z1p, za)))


def _pick_row_tile(n):
    """Largest row tile (multiple of 8, dividing N) whose double-buffered bf16
    P slab stays under ~24 MiB (fits v7x's 64 MiB VMEM with room for the
    resident v / hom / accumulators); small graphs are taken untiled."""
    if n <= 512:
        return n
    budget_rows = (24 * 1024 * 1024) // (2 * 2 * n)   # 2 buffers x bf16 x N cols
    for cand in (2048, 1024, 512, 256, 128, 64, 32, 16, 8):
        if cand <= budget_rows and n % cand == 0:
            return cand
    return n  # TODO(synk): ragged N (not a multiple of 8) falls back to untiled P.


# ----------------------------------------------------------------------------
# DualChannelContrastiveHead forward (single fused pallas_call)
# ----------------------------------------------------------------------------
def dual_channel_contrastive_head(hom_bases, p_matrix, x, params, cfg, *,
                                  use_bf16_matmul=True):
    K = int(cfg["K"])
    assert K >= 1, "fused kernel assumes at least one propagation level"
    N, F = x.shape
    assert hom_bases.shape == (K + 1, N, F)

    h_hats = (float(cfg["h_hat_ch1"]), float(cfg["h_hat_ch1_prime"]),
              float(cfg["h_hat_ch2"]), float(cfg["h_hat_ch2_prime"]),
              float(cfg["h_hat_anchor"]))

    # Stack the 5 Combination weights with the level axis leading -> [K+1, 5, F]
    # so the kernel streams exactly one level slab per k (shared by all views).
    w_lvl = jnp.stack([params["w_ch1"], params["w_ch1_prime"], params["w_ch2"],
                       params["w_ch2_prime"], params["w_anchor"]], axis=1)
    w0 = w_lvl[0]                    # [5, F]
    hom0 = hom_bases[0]              # [N, F]

    TM = _pick_row_tile(N)
    R = N // TM
    p_in = p_matrix.astype(jnp.bfloat16) if use_bf16_matmul else p_matrix
    p_bytes = 2 if use_bf16_matmul else 4

    kernel = functools.partial(
        _fused_head_kernel,
        h_hats=h_hats, tau=float(cfg["tau"]),
        inv_temp=1.0 / float(cfg["temperature"]))

    vmem_est = (2 * TM * N * p_bytes                     # streamed P slabs (2 bufs)
                + 2 * (N * F * 4 + 5 * F * 4)            # hom[k] + w[k] (2 bufs)
                + 2 * N * F * 4 + 5 * F * 4              # hom0, x, w0 (resident)
                + 2 * N * F * 4 + N * F * p_bytes        # v, vnew, vb scratch
                + 5 * N * F * 4                          # 5 view accumulators
                + 2 * (2 * N * F * 4 + 4))               # outputs
    vmem_limit = int(min(max(2 * vmem_est, 16 * 1024 * 1024), 64 * 1024 * 1024))

    z_cat, loss = pl.pallas_call(
        kernel,
        out_shape=(jax.ShapeDtypeStruct((N, 2 * F), jnp.float32),
                   jax.ShapeDtypeStruct((1, 1), jnp.float32)),
        grid_spec=pltpu.PrefetchScalarGridSpec(
            num_scalar_prefetch=0,
            grid=(K, R),
            in_specs=[
                pl.BlockSpec((N, F), lambda k, r: (0, 0)),            # hom level 0
                pl.BlockSpec((5, F), lambda k, r: (0, 0)),            # w   level 0
                pl.BlockSpec((1, N, F), lambda k, r: (k + 1, 0, 0)),  # hom level k+1
                pl.BlockSpec((1, 5, F), lambda k, r: (k + 1, 0, 0)),  # w   level k+1
                pl.BlockSpec((TM, N), lambda k, r: (r, 0)),           # P row slab
                pl.BlockSpec((N, F), lambda k, r: (0, 0)),            # X
            ],
            out_specs=[
                pl.BlockSpec((N, 2 * F), lambda k, r: (0, 0)),        # [z1 | z2]
                pl.BlockSpec((1, 1), lambda k, r: (0, 0)),            # total loss
            ],
            scratch_shapes=[
                pltpu.VMEM((N, F), jnp.float32),                      # v_k
                pltpu.VMEM((N, F), jnp.float32),                      # P @ v_k (f32 acc)
                pltpu.VMEM((N, F),
                           jnp.bfloat16 if use_bf16_matmul else jnp.float32),
                pltpu.VMEM((5, N, F), jnp.float32),                   # 5 view accumulators
            ],
        ),
        compiler_params=pltpu.CompilerParams(
            # Both grid axes carry state (v_k recursion + shared accumulators),
            # so they must remain sequential.
            # TODO(synk): a v7x 2-TensorCore split would need an F-axis (or
            # graph-partition) decomposition of the recursion; not done here.
            dimension_semantics=("arbitrary", "arbitrary"),
            vmem_limit_bytes=vmem_limit,
        ),
    )(hom0, w0, hom_bases, w_lvl, p_in, x)

    z1 = z_cat[:, :F]
    z2 = z_cat[:, F:]
    return z1, z2, loss[0, 0]


# ----------------------------------------------------------------------------
# main
# ----------------------------------------------------------------------------
if __name__ == "__main__":
    N, F, K = 16, 32, 3

    cfg = dict(
        K=K,
        tau=0.5,
        h_hat_ch1=0.2,
        h_hat_ch1_prime=0.25,
        h_hat_ch2=0.8,
        h_hat_ch2_prime=0.75,
        h_hat_anchor=0.5,
        temperature=0.1,
    )

    key = jax.random.PRNGKey(0)
    kx, kp, kw1, kw2, kw3, kw4, kw5 = jax.random.split(key, 7)

    # module inputs
    x = jax.random.normal(kx, (N, F), dtype=jnp.float32)
    a = jax.random.uniform(kp, (N, N), dtype=jnp.float32)
    p_matrix = a / jnp.sum(a, axis=1, keepdims=True)        # row-stochastic propagation

    # precomputed homophily bases [X, PX, ..., P^K X] -> stacked [K+1, N, F]
    bases = [x]
    for _ in range(K):
        bases.append(p_matrix @ bases[-1])
    hom_bases = jnp.stack(bases, axis=0).astype(jnp.float32)

    # deterministic Combination weights (one per view generator), shape [K+1, F]
    def init_w(k_):
        return jax.random.uniform(k_, (K + 1, F), jnp.float32, minval=0.9, maxval=1.1)

    params = dict(
        w_ch1=init_w(kw1),
        w_ch1_prime=init_w(kw2),
        w_ch2=init_w(kw3),
        w_ch2_prime=init_w(kw4),
        w_anchor=init_w(kw5),
    )

    fwd = jax.jit(functools.partial(dual_channel_contrastive_head, cfg=cfg))
    z1, z2, total_loss = fwd(hom_bases, p_matrix, x, params)

    jax.block_until_ready((z1, z2, total_loss))
    assert z1.shape == (N, F) and z2.shape == (N, F) and total_loss.shape == ()
    assert bool(jnp.isfinite(total_loss))
    print("KERNEL_OK")
</pallas_src>

<mosaic_0001>
module attributes {stable_mosaic.version = 11 : i64} {
  func.func @_fused_head_kernel(%arg0: i32, %arg1: i32, %arg2: memref<16x32xf32, #tpu.memory_space<vmem>>, %arg3: memref<5x32xf32, #tpu.memory_space<vmem>>, %arg4: memref<1x16x32xf32, #tpu.memory_space<vmem>>, %arg5: memref<1x5x32xf32, #tpu.memory_space<vmem>>, %arg6: memref<16x16xbf16, #tpu.memory_space<vmem>>, %arg7: memref<16x32xf32, #tpu.memory_space<vmem>>, %arg8: memref<16x64xf32, #tpu.memory_space<vmem>>, %arg9: memref<1x1xf32, #tpu.memory_space<vmem>>, %arg10: memref<16x32xf32, #tpu.memory_space<vmem>>, %arg11: memref<16x32xf32, #tpu.memory_space<vmem>>, %arg12: memref<16x32xbf16, #tpu.memory_space<vmem>>, %arg13: memref<5x16x32xf32, #tpu.memory_space<vmem>>) attributes {dimension_semantics = [#tpu.dimension_semantics<arbitrary>, #tpu.dimension_semantics<arbitrary>], iteration_bounds = array<i64: 3, 1>, scalar_prefetch = 0 : i64, scratch_operands = 4 : i64, tpu.core_type = #tpu.core_type<tc>, window_params = [{pipeline_mode = #tpu.pipeline_mode<synchronous>, transform_indices = @transform_0, window_bounds = array<i64: 16, 32>}, {pipeline_mode = #tpu.pipeline_mode<synchronous>, transform_indices = @transform_1, window_bounds = array<i64: 5, 32>}, {transform_indices = @transform_2, window_bounds = array<i64: 1, 16, 32>}, {transform_indices = @transform_3, window_bounds = array<i64: 1, 5, 32>}, {transform_indices = @transform_4, window_bounds = array<i64: 16, 16>}, {pipeline_mode = #tpu.pipeline_mode<synchronous>, transform_indices = @transform_5, window_bounds = array<i64: 16, 32>}, {pipeline_mode = #tpu.pipeline_mode<synchronous>, transform_indices = @transform_6, window_bounds = array<i64: 16, 64>}, {pipeline_mode = #tpu.pipeline_mode<synchronous>, transform_indices = @transform_7, window_bounds = array<i64: 1, 1>}]} {
    %c0_i32 = arith.constant 0 : i32
    %0 = arith.cmpi eq, %arg0, %c0_i32 : i32
    %c0_i32_0 = arith.constant 0 : i32
    %1 = arith.cmpi eq, %arg1, %c0_i32_0 : i32
    %2 = arith.andi %0, %1 : i1
    %3 = arith.extui %2 : i1 to i32
    %c0_i32_1 = arith.constant 0 : i32
    %4 = arith.cmpi ne, %3, %c0_i32_1 : i32
    scf.if %4 {
      %c0_10 = arith.constant 0 : index
      %c0_11 = arith.constant 0 : index
      %20 = vector.load %arg7[%c0_10, %c0_11] : memref<16x32xf32, #tpu.memory_space<vmem>>, vector<16x32xf32>
      %21 = arith.mulf %20, %20 : vector<16x32xf32>
      %22 = vector.shape_cast %21 : vector<16x32xf32> to vector<1x16x32xf32>
      %cst_12 = arith.constant dense<0.000000e+00> : vector<1xf32>
      %23 = vector.multi_reduction <add>, %22, %cst_12 [1, 2] : vector<1x16x32xf32> to vector<1xf32>
      %24 = vector.shape_cast %23 : vector<1xf32> to vector<1x1x1xf32>
      %25 = vector.extract %24[0, 0, 0] : f32 from vector<1x1x1xf32>
      %cst_13 = arith.constant 9.99999996E-13 : f32
      %26 = arith.addf %25, %cst_13 : f32
      %27 = math.rsqrt %26 : f32
      %28 = vector.broadcast %27 : f32 to vector<16x32xf32>
      %29 = arith.mulf %20, %28 : vector<16x32xf32>
      %c0_14 = arith.constant 0 : index
      %c0_15 = arith.constant 0 : index
      %30 = vector.load %arg10[%c0_14, %c0_15] : memref<16x32xf32, #tpu.memory_space<vmem>>, vector<16x32xf32>
      tpu.vector_store %arg10[%c0_14, %c0_15], %29 {strides = array<i32>} : memref<16x32xf32, #tpu.memory_space<vmem>>, vector<16x32xf32>,
      %31 = arith.truncf %29 : vector<16x32xf32> to vector<16x32xbf16>
      %c0_16 = arith.constant 0 : index
      %c0_17 = arith.constant 0 : index
      %32 = vector.load %arg12[%c0_16, %c0_17] : memref<16x32xbf16, #tpu.memory_space<vmem>>, vector<16x32xbf16>
      tpu.vector_store %arg12[%c0_16, %c0_17], %31 {strides = array<i32>} : memref<16x32xbf16, #tpu.memory_space<vmem>>, vector<16x32xbf16>,
      %c0_18 = arith.constant 0 : index
      %c0_19 = arith.constant 0 : index
      %33 = vector.load %arg2[%c0_18, %c0_19] : memref<16x32xf32, #tpu.memory_space<vmem>>, vector<16x32xf32>
      %c0_20 = arith.constant 0 : index
      %c0_21 = arith.constant 0 : index
      %34 = vector.load %arg3[%c0_20, %c0_21] : memref<5x32xf32, #tpu.memory_space<vmem>>, vector<5x32xf32>
      %35 = vector.extract_strided_slice %34 {offsets = [0, 0], sizes = [1, 32], strides = [1, 1]} : vector<5x32xf32> to vector<1x32xf32>
      %cst_22 = arith.constant 2.000000e-01 : f32
      %36 = vector.broadcast %cst_22 : f32 to vector<16x32xf32>
      %37 = arith.mulf %36, %33 : vector<16x32xf32>
      %cst_23 = arith.constant 8.000000e-01 : f32
      %38 = vector.broadcast %cst_23 : f32 to vector<16x32xf32>
      %39 = arith.mulf %38, %29 : vector<16x32xf32>
      %40 = arith.addf %37, %39 : vector<16x32xf32>
      %41 = vector.broadcast %35 : vector<1x32xf32> to vector<16x32xf32>
      %42 = arith.mulf %41, %40 : vector<16x32xf32>
      %c0_24 = arith.constant 0 : index
      %c0_25 = arith.constant 0 : index
      %c0_26 = arith.constant 0 : index
      %43 = vector.load %arg13[%c0_24, %c0_25, %c0_26] : memref<5x16x32xf32, #tpu.memory_space<vmem>>, vector<1x16x32xf32>
      %44 = vector.shape_cast %43 : vector<1x16x32xf32> to vector<16x32xf32>
      %45 = vector.shape_cast %42 : vector<16x32xf32> to vector<1x16x32xf32>
      tpu.vector_store %arg13[%c0_24, %c0_25, %c0_26], %45 {strides = array<i32>} : memref<5x16x32xf32, #tpu.memory_space<vmem>>, vector<1x16x32xf32>,
      %46 = vector.extract_strided_slice %34 {offsets = [1, 0], sizes = [1, 32], strides = [1, 1]} : vector<5x32xf32> to vector<1x32xf32>
      %cst_27 = arith.constant 2.500000e-01 : f32
      %47 = vector.broadcast %cst_27 : f32 to vector<16x32xf32>
      %48 = arith.mulf %47, %33 : vector<16x32xf32>
      %cst_28 = arith.constant 7.500000e-01 : f32
      %49 = vector.broadcast %cst_28 : f32 to vector<16x32xf32>
      %50 = arith.mulf %49, %29 : vector<16x32xf32>
      %51 = arith.addf %48, %50 : vector<16x32xf32>
      %52 = vector.broadcast %46 : vector<1x32xf32> to vector<16x32xf32>
      %53 = arith.mulf %52, %51 : vector<16x32xf32>
      %c1 = arith.constant 1 : index
      %c0_29 = arith.constant 0 : index
      %c0_30 = arith.constant 0 : index
      %54 = vector.load %arg13[%c1, %c0_29, %c0_30] : memref<5x16x32xf32, #tpu.memory_space<vmem>>, vector<1x16x32xf32>
      %55 = vector.shape_cast %54 : vector<1x16x32xf32> to vector<16x32xf32>
      %56 = vector.shape_cast %53 : vector<16x32xf32> to vector<1x16x32xf32>
      tpu.vector_store %arg13[%c1, %c0_29, %c0_30], %56 {strides = array<i32>} : memref<5x16x32xf32, #tpu.memory_space<vmem>>, vector<1x16x32xf32>,
      %57 = vector.extract_strided_slice %34 {offsets = [2, 0], sizes = [1, 32], strides = [1, 1]} : vector<5x32xf32> to vector<1x32xf32>
      %cst_31 = arith.constant 8.000000e-01 : f32
      %58 = vector.broadcast %cst_31 : f32 to vector<16x32xf32>
      %59 = arith.mulf %58, %33 : vector<16x32xf32>
      %cst_32 = arith.constant 2.000000e-01 : f32
      %60 = vector.broadcast %cst_32 : f32 to vector<16x32xf32>
      %61 = arith.mulf %60, %29 : vector<16x32xf32>
      %62 = arith.addf %59, %61 : vector<16x32xf32>
      %63 = vector.broadcast %57 : vector<1x32xf32> to vector<16x32xf32>
      %64 = arith.mulf %63, %62 : vector<16x32xf32>
      %c2 = arith.constant 2 : index
      %c0_33 = arith.constant 0 : index
      %c0_34 = arith.constant 0 : index
      %65 = vector.load %arg13[%c2, %c0_33, %c0_34] : memref<5x16x32xf32, #tpu.memory_space<vmem>>, vector<1x16x32xf32>
      %66 = vector.shape_cast %65 : vector<1x16x32xf32> to vector<16x32xf32>
      %67 = vector.shape_cast %64 : vector<16x32xf32> to vector<1x16x32xf32>
      tpu.vector_store %arg13[%c2, %c0_33, %c0_34], %67 {strides = array<i32>} : memref<5x16x32xf32, #tpu.memory_space<vmem>>, vector<1x16x32xf32>,
      %68 = vector.extract_strided_slice %34 {offsets = [3, 0], sizes = [1, 32], strides = [1, 1]} : vector<5x32xf32> to vector<1x32xf32>
      %cst_35 = arith.constant 7.500000e-01 : f32
      %69 = vector.broadcast %cst_35 : f32 to vector<16x32xf32>
      %70 = arith.mulf %69, %33 : vector<16x32xf32>
      %cst_36 = arith.constant 2.500000e-01 : f32
      %71 = vector.broadcast %cst_36 : f32 to vector<16x32xf32>
      %72 = arith.mulf %71, %29 : vector<16x32xf32>
      %73 = arith.addf %70, %72 : vector<16x32xf32>
      %74 = vector.broadcast %68 : vector<1x32xf32> to vector<16x32xf32>
      %75 = arith.mulf %74, %73 : vector<16x32xf32>
      %c3 = arith.constant 3 : index
      %c0_37 = arith.constant 0 : index
      %c0_38 = arith.constant 0 : index
      %76 = vector.load %arg13[%c3, %c0_37, %c0_38] : memref<5x16x32xf32, #tpu.memory_space<vmem>>, vector<1x16x32xf32>
      %77 = vector.shape_cast %76 : vector<1x16x32xf32> to vector<16x32xf32>
      %78 = vector.shape_cast %75 : vector<16x32xf32> to vector<1x16x32xf32>
      tpu.vector_store %arg13[%c3, %c0_37, %c0_38], %78 {strides = array<i32>} : memref<5x16x32xf32, #tpu.memory_space<vmem>>, vector<1x16x32xf32>,
      %79 = vector.extract_strided_slice %34 {offsets = [4, 0], sizes = [1, 32], strides = [1, 1]} : vector<5x32xf32> to vector<1x32xf32>
      %cst_39 = arith.constant 5.000000e-01 : f32
      %80 = vector.broadcast %cst_39 : f32 to vector<16x32xf32>
      %81 = arith.mulf %80, %33 : vector<16x32xf32>
      %cst_40 = arith.constant 5.000000e-01 : f32
      %82 = vector.broadcast %cst_40 : f32 to vector<16x32xf32>
      %83 = arith.mulf %82, %29 : vector<16x32xf32>
      %84 = arith.addf %81, %83 : vector<16x32xf32>
      %85 = vector.broadcast %79 : vector<1x32xf32> to vector<16x32xf32>
      %86 = arith.mulf %85, %84 : vector<16x32xf32>
      %c4 = arith.constant 4 : index
      %c0_41 = arith.constant 0 : index
      %c0_42 = arith.constant 0 : index
      %87 = vector.load %arg13[%c4, %c0_41, %c0_42] : memref<5x16x32xf32, #tpu.memory_space<vmem>>, vector<1x16x32xf32>
      %88 = vector.shape_cast %87 : vector<1x16x32xf32> to vector<16x32xf32>
      %89 = vector.shape_cast %86 : vector<16x32xf32> to vector<1x16x32xf32>
      tpu.vector_store %arg13[%c4, %c0_41, %c0_42], %89 {strides = array<i32>} : memref<5x16x32xf32, #tpu.memory_space<vmem>>, vector<1x16x32xf32>,
    } else {
    }
    %c16_i32 = arith.constant 16 : i32
    %5 = arith.muli %arg1, %c16_i32 : i32
    %6 = tpu.assume_multiple %5, 16 : i32
    %c0 = arith.constant 0 : index
    %c0_2 = arith.constant 0 : index
    %7 = vector.load %arg6[%c0, %c0_2] : memref<16x16xbf16, #tpu.memory_space<vmem>>, vector<16x16xbf16>
    %c0_3 = arith.constant 0 : index
    %c0_4 = arith.constant 0 : index
    %8 = vector.load %arg12[%c0_3, %c0_4] : memref<16x32xbf16, #tpu.memory_space<vmem>>, vector<16x32xbf16>
    %cst = arith.constant dense<0.000000e+00> : vector<16x32xf32>
    %9 = tpu.matmul %7, %8, %cst {dimension_numbers = #tpu.dot_dimension_numbers<[1], [0], [0], [1], [0, 0, 1, 1], [], []>} : vector<16x16xbf16>, vector<16x32xbf16>, vector<16x32xf32> -> vector<16x32xf32>
    %10 = arith.index_cast %6 : i32 to index
    %c0_5 = arith.constant 0 : index
    %11 = vector.load %arg11[%10, %c0_5] : memref<16x32xf32, #tpu.memory_space<vmem>>, vector<16x32xf32>
    tpu.vector_store %arg11[%10, %c0_5], %9 {strides = array<i32>} : memref<16x32xf32, #tpu.memory_space<vmem>>, vector<16x32xf32>,
    %c0_i32_6 = arith.constant 0 : i32
    %12 = arith.cmpi eq, %arg1, %c0_i32_6 : i32
    %13 = arith.extui %12 : i1 to i32
    %c0_i32_7 = arith.constant 0 : i32
    %14 = arith.cmpi ne, %13, %c0_i32_7 : i32
    scf.if %14 {
      %c0_10 = arith.constant 0 : index
      %c0_11 = arith.constant 0 : index
      %20 = vector.load %arg10[%c0_10, %c0_11] : memref<16x32xf32, #tpu.memory_space<vmem>>, vector<16x32xf32>
      %c0_12 = arith.constant 0 : index
      %c0_13 = arith.constant 0 : index
      %21 = vector.load %arg11[%c0_12, %c0_13] : memref<16x32xf32, #tpu.memory_space<vmem>>, vector<16x32xf32>
      %22 = arith.mulf %21, %20 : vector<16x32xf32>
      %23 = vector.shape_cast %22 : vector<16x32xf32> to vector<1x16x32xf32>
      %cst_14 = arith.constant dense<0.000000e+00> : vector<1xf32>
      %24 = vector.multi_reduction <add>, %23, %cst_14 [1, 2] : vector<1x16x32xf32> to vector<1xf32>
      %25 = vector.shape_cast %24 : vector<1xf32> to vector<1x1x1xf32>
      %26 = vector.extract %25[0, 0, 0] : f32 from vector<1x1x1xf32>
      %cst_15 = arith.constant 5.000000e-01 : f32
      %27 = arith.mulf %cst_15, %26 : f32
      %28 = vector.broadcast %27 : f32 to vector<16x32xf32>
      %29 = arith.mulf %28, %20 : vector<16x32xf32>
      %30 = arith.subf %21, %29 : vector<16x32xf32>
      %31 = arith.mulf %30, %30 : vector<16x32xf32>
      %32 = vector.shape_cast %31 : vector<16x32xf32> to vector<1x16x32xf32>
      %cst_16 = arith.constant dense<0.000000e+00> : vector<1xf32>
      %33 = vector.multi_reduction <add>, %32, %cst_16 [1, 2] : vector<1x16x32xf32> to vector<1xf32>
      %34 = vector.shape_cast %33 : vector<1xf32> to vector<1x1x1xf32>
      %35 = vector.extract %34[0, 0, 0] : f32 from vector<1x1x1xf32>
      %cst_17 = arith.constant 9.99999996E-13 : f32
      %36 = arith.addf %35, %cst_17 : f32
      %37 = math.rsqrt %36 : f32
      %38 = vector.broadcast %37 : f32 to vector<16x32xf32>
      %39 = arith.mulf %30, %38 : vector<16x32xf32>
      %c0_18 = arith.constant 0 : index
      %c0_19 = arith.constant 0 : index
      %40 = vector.load %arg10[%c0_18, %c0_19] : memref<16x32xf32, #tpu.memory_space<vmem>>, vector<16x32xf32>
      tpu.vector_store %arg10[%c0_18, %c0_19], %39 {strides = array<i32>} : memref<16x32xf32, #tpu.memory_space<vmem>>, vector<16x32xf32>,
      %41 = arith.truncf %39 : vector<16x32xf32> to vector<16x32xbf16>
      %c0_20 = arith.constant 0 : index
      %c0_21 = arith.constant 0 : index
      %42 = vector.load %arg12[%c0_20, %c0_21] : memref<16x32xbf16, #tpu.memory_space<vmem>>, vector<16x32xbf16>
      tpu.vector_store %arg12[%c0_20, %c0_21], %41 {strides = array<i32>} : memref<16x32xbf16, #tpu.memory_space<vmem>>, vector<16x32xbf16>,
      %c0_22 = arith.constant 0 : index
      %c0_23 = arith.constant 0 : index
      %c0_24 = arith.constant 0 : index
      %43 = vector.load %arg4[%c0_22, %c0_23, %c0_24] : memref<1x16x32xf32, #tpu.memory_space<vmem>>, vector<1x16x32xf32>
      %44 = vector.shape_cast %43 : vector<1x16x32xf32> to vector<16x32xf32>
      %c0_25 = arith.constant 0 : index
      %c0_26 = arith.constant 0 : index
      %c0_27 = arith.constant 0 : index
      %45 = vector.load %arg5[%c0_25, %c0_26, %c0_27] : memref<1x5x32xf32, #tpu.memory_space<vmem>>, vector<1x5x32xf32>
      %46 = vector.shape_cast %45 : vector<1x5x32xf32> to vector<5x32xf32>
      %c0_28 = arith.constant 0 : index
      %c0_29 = arith.constant 0 : index
      %c0_30 = arith.constant 0 : index
      %47 = vector.load %arg13[%c0_28, %c0_29, %c0_30] : memref<5x16x32xf32, #tpu.memory_space<vmem>>, vector<1x16x32xf32>
      %48 = vector.shape_cast %47 : vector<1x16x32xf32> to vector<16x32xf32>
      %49 = vector.extract_strided_slice %46 {offsets = [0, 0], sizes = [1, 32], strides = [1, 1]} : vector<5x32xf32> to vector<1x32xf32>
      %cst_31 = arith.constant 2.000000e-01 : f32
      %50 = vector.broadcast %cst_31 : f32 to vector<16x32xf32>
      %51 = arith.mulf %50, %44 : vector<16x32xf32>
      %cst_32 = arith.constant 8.000000e-01 : f32
      %52 = vector.broadcast %cst_32 : f32 to vector<16x32xf32>
      %53 = arith.mulf %52, %39 : vector<16x32xf32>
      %54 = arith.addf %51, %53 : vector<16x32xf32>
      %55 = vector.broadcast %49 : vector<1x32xf32> to vector<16x32xf32>
      %56 = arith.mulf %55, %54 : vector<16x32xf32>
      %57 = arith.addf %48, %56 : vector<16x32xf32>
      %c0_33 = arith.constant 0 : index
      %c0_34 = arith.constant 0 : index
      %c0_35 = arith.constant 0 : index
      %58 = vector.load %arg13[%c0_33, %c0_34, %c0_35] : memref<5x16x32xf32, #tpu.memory_space<vmem>>, vector<1x16x32xf32>
      %59 = vector.shape_cast %58 : vector<1x16x32xf32> to vector<16x32xf32>
      %60 = vector.shape_cast %57 : vector<16x32xf32> to vector<1x16x32xf32>
      tpu.vector_store %arg13[%c0_33, %c0_34, %c0_35], %60 {strides = array<i32>} : memref<5x16x32xf32, #tpu.memory_space<vmem>>, vector<1x16x32xf32>,
      %c1 = arith.constant 1 : index
      %c0_36 = arith.constant 0 : index
      %c0_37 = arith.constant 0 : index
      %61 = vector.load %arg13[%c1, %c0_36, %c0_37] : memref<5x16x32xf32, #tpu.memory_space<vmem>>, vector<1x16x32xf32>
      %62 = vector.shape_cast %61 : vector<1x16x32xf32> to vector<16x32xf32>
      %63 = vector.extract_strided_slice %46 {offsets = [1, 0], sizes = [1, 32], strides = [1, 1]} : vector<5x32xf32> to vector<1x32xf32>
      %cst_38 = arith.constant 2.500000e-01 : f32
      %64 = vector.broadcast %cst_38 : f32 to vector<16x32xf32>
      %65 = arith.mulf %64, %44 : vector<16x32xf32>
      %cst_39 = arith.constant 7.500000e-01 : f32
      %66 = vector.broadcast %cst_39 : f32 to vector<16x32xf32>
      %67 = arith.mulf %66, %39 : vector<16x32xf32>
      %68 = arith.addf %65, %67 : vector<16x32xf32>
      %69 = vector.broadcast %63 : vector<1x32xf32> to vector<16x32xf32>
      %70 = arith.mulf %69, %68 : vector<16x32xf32>
      %71 = arith.addf %62, %70 : vector<16x32xf32>
      %c1_40 = arith.constant 1 : index
      %c0_41 = arith.constant 0 : index
      %c0_42 = arith.constant 0 : index
      %72 = vector.load %arg13[%c1_40, %c0_41, %c0_42] : memref<5x16x32xf32, #tpu.memory_space<vmem>>, vector<1x16x32xf32>
      %73 = vector.shape_cast %72 : vector<1x16x32xf32> to vector<16x32xf32>
      %74 = vector.shape_cast %71 : vector<16x32xf32> to vector<1x16x32xf32>
      tpu.vector_store %arg13[%c1_40, %c0_41, %c0_42], %74 {strides = array<i32>} : memref<5x16x32xf32, #tpu.memory_space<vmem>>, vector<1x16x32xf32>,
      %c2 = arith.constant 2 : index
      %c0_43 = arith.constant 0 : index
      %c0_44 = arith.constant 0 : index
      %75 = vector.load %arg13[%c2, %c0_43, %c0_44] : memref<5x16x32xf32, #tpu.memory_space<vmem>>, vector<1x16x32xf32>
      %76 = vector.shape_cast %75 : vector<1x16x32xf32> to vector<16x32xf32>
      %77 = vector.extract_strided_slice %46 {offsets = [2, 0], sizes = [1, 32], strides = [1, 1]} : vector<5x32xf32> to vector<1x32xf32>
      %cst_45 = arith.constant 8.000000e-01 : f32
      %78 = vector.broadcast %cst_45 : f32 to vector<16x32xf32>
      %79 = arith.mulf %78, %44 : vector<16x32xf32>
      %cst_46 = arith.constant 2.000000e-01 : f32
      %80 = vector.broadcast %cst_46 : f32 to vector<16x32xf32>
      %81 = arith.mulf %80, %39 : vector<16x32xf32>
      %82 = arith.addf %79, %81 : vector<16x32xf32>
      %83 = vector.broadcast %77 : vector<1x32xf32> to vector<16x32xf32>
      %84 = arith.mulf %83, %82 : vector<16x32xf32>
      %85 = arith.addf %76, %84 : vector<16x32xf32>
      %c2_47 = arith.constant 2 : index
      %c0_48 = arith.constant 0 : index
      %c0_49 = arith.constant 0 : index
      %86 = vector.load %arg13[%c2_47, %c0_48, %c0_49] : memref<5x16x32xf32, #tpu.memory_space<vmem>>, vector<1x16x32xf32>
      %87 = vector.shape_cast %86 : vector<1x16x32xf32> to vector<16x32xf32>
      %88 = vector.shape_cast %85 : vector<16x32xf32> to vector<1x16x32xf32>
      tpu.vector_store %arg13[%c2_47, %c0_48, %c0_49], %88 {strides = array<i32>} : memref<5x16x32xf32, #tpu.memory_space<vmem>>, vector<1x16x32xf32>,
      %c3 = arith.constant 3 : index
      %c0_50 = arith.constant 0 : index
      %c0_51 = arith.constant 0 : index
      %89 = vector.load %arg13[%c3, %c0_50, %c0_51] : memref<5x16x32xf32, #tpu.memory_space<vmem>>, vector<1x16x32xf32>
      %90 = vector.shape_cast %89 : vector<1x16x32xf32> to vector<16x32xf32>
      %91 = vector.extract_strided_slice %46 {offsets = [3, 0], sizes = [1, 32], strides = [1, 1]} : vector<5x32xf32> to vector<1x32xf32>
      %cst_52 = arith.constant 7.500000e-01 : f32
      %92 = vector.broadcast %cst_52 : f32 to vector<16x32xf32>
      %93 = arith.mulf %92, %44 : vector<16x32xf32>
      %cst_53 = arith.constant 2.500000e-01 : f32
      %94 = vector.broadcast %cst_53 : f32 to vector<16x32xf32>
      %95 = arith.mulf %94, %39 : vector<16x32xf32>
      %96 = arith.addf %93, %95 : vector<16x32xf32>
      %97 = vector.broadcast %91 : vector<1x32xf32> to vector<16x32xf32>
      %98 = arith.mulf %97, %96 : vector<16x32xf32>
      %99 = arith.addf %90, %98 : vector<16x32xf32>
      %c3_54 = arith.constant 3 : index
      %c0_55 = arith.constant 0 : index
      %c0_56 = arith.constant 0 : index
      %100 = vector.load %arg13[%c3_54, %c0_55, %c0_56] : memref<5x16x32xf32, #tpu.memory_space<vmem>>, vector<1x16x32xf32>
      %101 = vector.shape_cast %100 : vector<1x16x32xf32> to vector<16x32xf32>
      %102 = vector.shape_cast %99 : vector<16x32xf32> to vector<1x16x32xf32>
      tpu.vector_store %arg13[%c3_54, %c0_55, %c0_56], %102 {strides = array<i32>} : memref<5x16x32xf32, #tpu.memory_space<vmem>>, vector<1x16x32xf32>,
      %c4 = arith.constant 4 : index
      %c0_57 = arith.constant 0 : index
      %c0_58 = arith.constant 0 : index
      %103 = vector.load %arg13[%c4, %c0_57, %c0_58] : memref<5x16x32xf32, #tpu.memory_space<vmem>>, vector<1x16x32xf32>
      %104 = vector.shape_cast %103 : vector<1x16x32xf32> to vector<16x32xf32>
      %105 = vector.extract_strided_slice %46 {offsets = [4, 0], sizes = [1, 32], strides = [1, 1]} : vector<5x32xf32> to vector<1x32xf32>
      %cst_59 = arith.constant 5.000000e-01 : f32
      %106 = vector.broadcast %cst_59 : f32 to vector<16x32xf32>
      %107 = arith.mulf %106, %44 : vector<16x32xf32>
      %cst_60 = arith.constant 5.000000e-01 : f32
      %108 = vector.broadcast %cst_60 : f32 to vector<16x32xf32>
      %109 = arith.mulf %108, %39 : vector<16x32xf32>
      %110 = arith.addf %107, %109 : vector<16x32xf32>
      %111 = vector.broadcast %105 : vector<1x32xf32> to vector<16x32xf32>
      %112 = arith.mulf %111, %110 : vector<16x32xf32>
      %113 = arith.addf %104, %112 : vector<16x32xf32>
      %c4_61 = arith.constant 4 : index
      %c0_62 = arith.constant 0 : index
      %c0_63 = arith.constant 0 : index
      %114 = vector.load %arg13[%c4_61, %c0_62, %c0_63] : memref<5x16x32xf32, #tpu.memory_space<vmem>>, vector<1x16x32xf32>
      %115 = vector.shape_cast %114 : vector<1x16x32xf32> to vector<16x32xf32>
      %116 = vector.shape_cast %113 : vector<16x32xf32> to vector<1x16x32xf32>
      tpu.vector_store %arg13[%c4_61, %c0_62, %c0_63], %116 {strides = array<i32>} : memref<5x16x32xf32, #tpu.memory_space<vmem>>, vector<1x16x32xf32>,
    } else {
    }
    %c2_i32 = arith.constant 2 : i32
    %15 = arith.cmpi eq, %arg0, %c2_i32 : i32
    %c0_i32_8 = arith.constant 0 : i32
    %16 = arith.cmpi eq, %arg1, %c0_i32_8 : i32
    %17 = arith.andi %15, %16 : i1
    %18 = arith.extui %17 : i1 to i32
    %c0_i32_9 = arith.constant 0 : i32
    %19 = arith.cmpi ne, %18, %c0_i32_9 : i32
    scf.if %19 {
      %c0_10 = arith.constant 0 : index
      %c0_11 = arith.constant 0 : index
      %c0_12 = arith.constant 0 : index
      %20 = vector.load %arg13[%c0_10, %c0_11, %c0_12] : memref<5x16x32xf32, #tpu.memory_space<vmem>>, vector<1x16x32xf32>
      %21 = vector.shape_cast %20 : vector<1x16x32xf32> to vector<16x32xf32>
      %c1 = arith.constant 1 : index
      %c0_13 = arith.constant 0 : index
      %c0_14 = arith.constant 0 : index
      %22 = vector.load %arg13[%c1, %c0_13, %c0_14] : memref<5x16x32xf32, #tpu.memory_space<vmem>>, vector<1x16x32xf32>
      %23 = vector.shape_cast %22 : vector<1x16x32xf32> to vector<16x32xf32>
      %c2 = arith.constant 2 : index
      %c0_15 = arith.constant 0 : index
      %c0_16 = arith.constant 0 : index
      %24 = vector.load %arg13[%c2, %c0_15, %c0_16] : memref<5x16x32xf32, #tpu.memory_space<vmem>>, vector<1x16x32xf32>
      %25 = vector.shape_cast %24 : vector<1x16x32xf32> to vector<16x32xf32>
      %c3 = arith.constant 3 : index
      %c0_17 = arith.constant 0 : index
      %c0_18 = arith.constant 0 : index
      %26 = vector.load %arg13[%c3, %c0_17, %c0_18] : memref<5x16x32xf32, #tpu.memory_space<vmem>>, vector<1x16x32xf32>
      %27 = vector.shape_cast %26 : vector<1x16x32xf32> to vector<16x32xf32>
      %c4 = arith.constant 4 : index
      %c0_19 = arith.constant 0 : index
      %c0_20 = arith.constant 0 : index
      %28 = vector.load %arg13[%c4, %c0_19, %c0_20] : memref<5x16x32xf32, #tpu.memory_space<vmem>>, vector<1x16x32xf32>
      %29 = vector.shape_cast %28 : vector<1x16x32xf32> to vector<16x32xf32>
      %c0_21 = arith.constant 0 : index
      %c0_22 = arith.constant 0 : index
      %30 = vector.load %arg8[%c0_21, %c0_22] : memref<16x64xf32, #tpu.memory_space<vmem>>, vector<16x32xf32>
      tpu.vector_store %arg8[%c0_21, %c0_22], %21 {strides = array<i32>} : memref<16x64xf32, #tpu.memory_space<vmem>>, vector<16x32xf32>,
      %c0_23 = arith.constant 0 : index
      %c32 = arith.constant 32 : index
      %31 = vector.load %arg8[%c0_23, %c32] : memref<16x64xf32, #tpu.memory_space<vmem>>, vector<16x32xf32>
      tpu.vector_store %arg8[%c0_23, %c32], %25 {strides = array<i32>} : memref<16x64xf32, #tpu.memory_space<vmem>>, vector<16x32xf32>,
      %32 = arith.mulf %21, %23 : vector<16x32xf32>
      %cst_24 = arith.constant dense<0.000000e+00> : vector<16xf32>
      %33 = vector.multi_reduction <add>, %32, %cst_24 [1] : vector<16x32xf32> to vector<16xf32>
      %34 = vector.shape_cast %33 : vector<16xf32> to vector<16x1xf32>
      %cst_25 = arith.constant 1.000000e+01 : f32
      %35 = vector.broadcast %cst_25 : f32 to vector<16x1xf32>
      %36 = arith.mulf %34, %35 : vector<16x1xf32>
      %37 = arith.mulf %21, %25 : vector<16x32xf32>
      %cst_26 = arith.constant dense<0.000000e+00> : vector<16xf32>
      %38 = vector.multi_reduction <add>, %37, %cst_26 [1] : vector<16x32xf32> to vector<16xf32>
      %39 = vector.shape_cast %38 : vector<16xf32> to vector<16x1xf32>
      %cst_27 = arith.constant 1.000000e+01 : f32
      %40 = vector.broadcast %cst_27 : f32 to vector<16x1xf32>
      %41 = arith.mulf %39, %40 : vector<16x1xf32>
      %42 = arith.mulf %21, %27 : vector<16x32xf32>
      %cst_28 = arith.constant dense<0.000000e+00> : vector<16xf32>
      %43 = vector.multi_reduction <add>, %42, %cst_28 [1] : vector<16x32xf32> to vector<16xf32>
      %44 = vector.shape_cast %43 : vector<16xf32> to vector<16x1xf32>
      %cst_29 = arith.constant 1.000000e+01 : f32
      %45 = vector.broadcast %cst_29 : f32 to vector<16x1xf32>
      %46 = arith.mulf %44, %45 : vector<16x1xf32>
      %47 = arith.mulf %21, %29 : vector<16x32xf32>
      %cst_30 = arith.constant dense<0.000000e+00> : vector<16xf32>
      %48 = vector.multi_reduction <add>, %47, %cst_30 [1] : vector<16x32xf32> to vector<16xf32>
      %49 = vector.shape_cast %48 : vector<16xf32> to vector<16x1xf32>
      %cst_31 = arith.constant 1.000000e+01 : f32
      %50 = vector.broadcast %cst_31 : f32 to vector<16x1xf32>
      %51 = arith.mulf %49, %50 : vector<16x1xf32>
      %52 = arith.maximumf %36, %41 : vector<16x1xf32>
      %53 = arith.maximumf %46, %51 : vector<16x1xf32>
      %54 = arith.maximumf %52, %53 : vector<16x1xf32>
      %55 = arith.subf %36, %54 : vector<16x1xf32>
      %56 = math.exp %55 : vector<16x1xf32>
      %57 = arith.subf %41, %54 : vector<16x1xf32>
      %58 = math.exp %57 : vector<16x1xf32>
      %59 = arith.addf %56, %58 : vector<16x1xf32>
      %60 = arith.subf %46, %54 : vector<16x1xf32>
      %61 = math.exp %60 : vector<16x1xf32>
      %62 = arith.addf %59, %61 : vector<16x1xf32>
      %63 = arith.subf %51, %54 : vector<16x1xf32>
      %64 = math.exp %63 : vector<16x1xf32>
      %65 = arith.addf %62, %64 : vector<16x1xf32>
      %66 = math.log %65 : vector<16x1xf32>
      %67 = arith.addf %54, %66 : vector<16x1xf32>
      %68 = arith.subf %67, %36 : vector<16x1xf32>
      %cst_32 = arith.constant dense<0.000000e+00> : vector<1xf32>
      %69 = vector.multi_reduction <add>, %68, %cst_32 [0] : vector<16x1xf32> to vector<1xf32>
      %70 = vector.shape_cast %69 : vector<1xf32> to vector<1x1xf32>
      %cst_33 = arith.constant 6.250000e-02 : f32
      %71 = vector.broadcast %cst_33 : f32 to vector<1x1xf32>
      %72 = arith.mulf %70, %71 : vector<1x1xf32>
      %73 = arith.mulf %25, %27 : vector<16x32xf32>
      %cst_34 = arith.constant dense<0.000000e+00> : vector<16xf32>
      %74 = vector.multi_reduction <add>, %73, %cst_34 [1] : vector<16x32xf32> to vector<16xf32>
      %75 = vector.shape_cast %74 : vector<16xf32> to vector<16x1xf32>
      %cst_35 = arith.constant 1.000000e+01 : f32
      %76 = vector.broadcast %cst_35 : f32 to vector<16x1xf32>
      %77 = arith.mulf %75, %76 : vector<16x1xf32>
      %78 = arith.mulf %25, %21 : vector<16x32xf32>
      %cst_36 = arith.constant dense<0.000000e+00> : vector<16xf32>
      %79 = vector.multi_reduction <add>, %78, %cst_36 [1] : vector<16x32xf32> to vector<16xf32>
      %80 = vector.shape_cast %79 : vector<16xf32> to vector<16x1xf32>
      %cst_37 = arith.constant 1.000000e+01 : f32
      %81 = vector.broadcast %cst_37 : f32 to vector<16x1xf32>
      %82 = arith.mulf %80, %81 : vector<16x1xf32>
      %83 = arith.mulf %25, %23 : vector<16x32xf32>
      %cst_38 = arith.constant dense<0.000000e+00> : vector<16xf32>
      %84 = vector.multi_reduction <add>, %83, %cst_38 [1] : vector<16x32xf32> to vector<16xf32>
      %85 = vector.shape_cast %84 : vector<16xf32> to vector<16x1xf32>
      %cst_39 = arith.constant 1.000000e+01 : f32
      %86 = vector.broadcast %cst_39 : f32 to vector<16x1xf32>
      %87 = arith.mulf %85, %86 : vector<16x1xf32>
      %88 = arith.mulf %25, %29 : vector<16x32xf32>
      %cst_40 = arith.constant dense<0.000000e+00> : vector<16xf32>
      %89 = vector.multi_reduction <add>, %88, %cst_40 [1] : vector<16x32xf32> to vector<16xf32>
      %90 = vector.shape_cast %89 : vector<16xf32> to vector<16x1xf32>
      %cst_41 = arith.constant 1.000000e+01 : f32
      %91 = vector.broadcast %cst_41 : f32 to vector<16x1xf32>
      %92 = arith.mulf %90, %91 : vector<16x1xf32>
      %93 = arith.maximumf %77, %82 : vector<16x1xf32>
      %94 = arith.maximumf %87, %92 : vector<16x1xf32>
      %95 = arith.maximumf %93, %94 : vector<16x1xf32>
      %96 = arith.subf %77, %95 : vector<16x1xf32>
      %97 = math.exp %96 : vector<16x1xf32>
      %98 = arith.subf %82, %95 : vector<16x1xf32>
      %99 = math.exp %98 : vector<16x1xf32>
      %100 = arith.addf %97, %99 : vector<16x1xf32>
      %101 = arith.subf %87, %95 : vector<16x1xf32>
      %102 = math.exp %101 : vector<16x1xf32>
      %103 = arith.addf %100, %102 : vector<16x1xf32>
      %104 = arith.subf %92, %95 : vector<16x1xf32>
      %105 = math.exp %104 : vector<16x1xf32>
      %106 = arith.addf %103, %105 : vector<16x1xf32>
      %107 = math.log %106 : vector<16x1xf32>
      %108 = arith.addf %95, %107 : vector<16x1xf32>
      %109 = arith.subf %108, %77 : vector<16x1xf32>
      %cst_42 = arith.constant dense<0.000000e+00> : vector<1xf32>
      %110 = vector.multi_reduction <add>, %109, %cst_42 [0] : vector<16x1xf32> to vector<1xf32>
      %111 = vector.shape_cast %110 : vector<1xf32> to vector<1x1xf32>
      %cst_43 = arith.constant 6.250000e-02 : f32
      %112 = vector.broadcast %cst_43 : f32 to vector<1x1xf32>
      %113 = arith.mulf %111, %112 : vector<1x1xf32>
      %114 = arith.addf %72, %113 : vector<1x1xf32>
      %c0_44 = arith.constant 0 : index
      %c0_45 = arith.constant 0 : index
      %115 = vector.load %arg9[%c0_44, %c0_45] : memref<1x1xf32, #tpu.memory_space<vmem>>, vector<1x1xf32>
      tpu.vector_store %arg9[%c0_44, %c0_45], %114 {strides = array<i32>} : memref<1x1xf32, #tpu.memory_space<vmem>>, vector<1x1xf32>,
    } else {
    }
    return
  }
  func.func @transform_0(%arg0: i32, %arg1: i32) -> (i32, i32) {
    %c0_i32 = arith.constant 0 : i32
    %c0_i32_0 = arith.constant 0 : i32
    %c0_i32_1 = arith.constant 0 : i32
    return %c0_i32, %c0_i32_0 : i32, i32
  }
  func.func @transform_1(%arg0: i32, %arg1: i32) -> (i32, i32) {
    %c0_i32 = arith.constant 0 : i32
    %c0_i32_0 = arith.constant 0 : i32
    %c0_i32_1 = arith.constant 0 : i32
    return %c0_i32, %c0_i32_0 : i32, i32
  }
  func.func @transform_2(%arg0: i32, %arg1: i32) -> (i32, i32, i32) {
    %c1_i32 = arith.constant 1 : i32
    %0 = arith.addi %arg0, %c1_i32 : i32
    %c0_i32 = arith.constant 0 : i32
    %c0_i32_0 = arith.constant 0 : i32
    %c0_i32_1 = arith.constant 0 : i32
    return %0, %c0_i32, %c0_i32_0 : i32, i32, i32
  }
  func.func @transform_3(%arg0: i32, %arg1: i32) -> (i32, i32, i32) {
    %c1_i32 = arith.constant 1 : i32
    %0 = arith.addi %arg0, %c1_i32 : i32
    %c0_i32 = arith.constant 0 : i32
    %c0_i32_0 = arith.constant 0 : i32
    %c0_i32_1 = arith.constant 0 : i32
    return %0, %c0_i32, %c0_i32_0 : i32, i32, i32
  }
  func.func @transform_4(%arg0: i32, %arg1: i32) -> (i32, i32) {
    %c0_i32 = arith.constant 0 : i32
    %c0_i32_0 = arith.constant 0 : i32
    return %arg1, %c0_i32 : i32, i32
  }
  func.func @transform_5(%arg0: i32, %arg1: i32) -> (i32, i32) {
    %c0_i32 = arith.constant 0 : i32
    %c0_i32_0 = arith.constant 0 : i32
    %c0_i32_1 = arith.constant 0 : i32
    return %c0_i32, %c0_i32_0 : i32, i32
  }
  func.func @transform_6(%arg0: i32, %arg1: i32) -> (i32, i32) {
    %c0_i32 = arith.constant 0 : i32
    %c0_i32_0 = arith.constant 0 : i32
    %c0_i32_1 = arith.constant 0 : i32
    return %c0_i32, %c0_i32_0 : i32, i32
  }
  func.func @transform_7(%arg0: i32, %arg1: i32) -> (i32, i32) {
    %c0_i32 = arith.constant 0 : i32
    %c0_i32_0 = arith.constant 0 : i32
    %c0_i32_1 = arith.constant 0 : i32
    return %c0_i32, %c0_i32_0 : i32, i32
  }
}

</mosaic_0001>

<bundles_post_ra>
// kernel: dual_channel_contrastive_head.1
= control target key start
LH: loop header
LB: loop body
LE: loop exit
PB: predicated region body
PF: predicated region fallthrough
CT: control target
= control target key end

     0   :  { %13 = vsyncpa [#allocation7], 0  ;;  %s1160_s24 = smov 0   ;;  %s1162_s25 = smov 0   ;;  %s1390_s0 = inlined_call_operand.vmem [shape: f32[16,32], index: 0, kind: input, shape index: {}]   ;;  %s1391_s1 = inlined_call_operand.vmem [shape: f32[5,32], index: 1, kind: input, shape index: {}]   ;;  %s1392_s2 = inlined_call_operand.vmem [shape: f32[4,16,32], index: 2, kind: input, shape index: {}]   ;;  %s1393_s3 = inlined_call_operand.vmem [shape: f32[4,5,32], index: 3, kind: input, shape index: {}]   ;;  %s1394_s4 = inlined_call_operand.vmem [shape: bf16[16,16], index: 4, kind: input, shape index: {}]   ;;  %s1395_s5 = inlined_call_operand.vmem [shape: f32[16,32], index: 5, kind: input, shape index: {}]   ;;  %s1396_s6 = inlined_call_operand.vmem [shape: f32[16,64], index: 6, kind: output, shape index: {0}]   ;;  %s1397_s7 = inlined_call_operand.hbm [shape: f32[1,1], index: 7, kind: output, shape index: {1}]  }
   0x1   :  { %s1164_s26 = smov 0  }
   0x2 LB: > { %s946_s27 = sadd.s32 4294967295, %s1114_s26   ;;  %s31_s28 = sadd.s32 1, %s1110_s25  ;;  %s1114_s26 = sphi %s1164_s26, %s19_s26   ;;  %s1110_s25 = sphi %s1162_s25, %s1400_s25   ;;  %s1106_s24 = sphi %s1160_s24, %s1399_s24  }
   0x3   : > { %p33_p0 = scmp.ge.s32.totalorder %s31_s28, 3  ;;  %p950_p1 = scmp.ge.s32.totalorder %s1114_s26, 1 }
   0x4   : > { %p271_p2 = scmp.lt.s32.totalorder %s1114_s26, 4 }
   0x5   : > { %s1402_s28 = smov (%p33_p0, %s31_s28), 0 }
   0x6   : > { %p272_p3 = pnand %p950_p1, %p271_p2 }
   0x7   : > { %s309_s29 = sadd.s32 (!%p272_p3), 1, %s1106_s24  ;;  %p329_p4 = scmp.eq.s32.totalorder (!%p272_p3), %s1106_s24, 0 }
   0x8   : > { %275 = sbr.rel (%p272_p3) target bundleno = 1305 (0x519), region = 44  ;;  %p310_p5 = scmp.lt.s32.totalorder (!%p272_p3), %s309_s29, 3 }
   0xf   : > { %s1404_s29 = smov (!%p310_p5, %s309_s29), 3  ;;  %334 = sbr.rel (!%p329_p4) target bundleno = 306 (0x132), region = 48 }
  0x10   : > { %s962_s30 = sshll.u32 %s1404_s29, 4  ;;  %s953_s8 = sshll.u32 %s1404_s29, 3  ;;  %v335_v0 = vld [vmem:[%s1395_s5] sm:$0xff] (%p329_p4)  ;;  %v336_v1 = vld [vmem:[%s1395_s5 + $0x8] sm:$0xff] (%p329_p4)  ;;  %vm339_vm0 = vcmask (%p329_p4), 261120   ;;  %v372_v16 = vlaneseq (%p329_p4) }
  0x11   : > { %s1186_s11 = scalar_lea.vmem %s1392_s2, %s962_s30  ;;  %s1191_s14 = scalar_lea.vmem %s1393_s3, %s953_s8  ;;  %v337_v2 = vmul.f32 (%p329_p4), %v335_v0, %v335_v0  ;;  %v338_v3 = vmul.f32 (%p329_p4), %v336_v1, %v336_v1  ;;  %v363_v18 = vld [vmem:[%s1390_s0] sm:$0xff] (%p329_p4)  ;;  %v364_v19 = vld [vmem:[%s1390_s0 + $0x8] sm:$0xff] (%p329_p4) }
  0x12   : > { %v373_v17 = vshrl.u32 (%p329_p4), %v372_v16, 7  ;;  %v365_v21 = vld [vmem:[%s1391_s1] sm:$0x1f] (%p329_p4)  ;;  %v366_v24 = vmul.f32 (%p329_p4), 0.2, %v363_v18  ;;  %v380_v28 = vmul.f32 (%p329_p4), 0.25, %v363_v18 }
  0x13   : > { %v340_v4 = vsel (%p329_p4), %vm339_vm0, %v337_v2, 0.0  ;;  %v341_v5 = vsel (%p329_p4), %vm339_vm0, %v338_v3, 0.0  ;;  %v367_v25 = vmul.f32 (%p329_p4), 0.2, %v364_v19  ;;  %v381_v29 = vmul.f32 (%p329_p4), 0.25, %v364_v19 }
  0x14   : > { %v342_v6 = vadd.f32 (%p329_p4), %v341_v5, %v340_v4  ;;  %v374_v20 = vsub.s32 (%p329_p4), 0, %v373_v17  ;;  %v388_v22 = vsub.s32 (%p329_p4), 1, %v373_v17  ;;  %v403_v23 = vsub.s32 (%p329_p4), 2, %v373_v17 }
  0x15   : > { %v418_v26 = vsub.s32 (%p329_p4), 3, %v373_v17  ;;  %v395_v30 = vmul.f32 (%p329_p4), 0.8, %v363_v18  ;;  %v396_v33 = vmul.f32 (%p329_p4), 0.8, %v364_v19  ;;  %v410_v34 = vmul.f32 (%p329_p4), 0.75, %v363_v18 }
  0x16   : > { %343 = vadd.xlane.f32.xlu0 %v342_v6  ;;  %v375_v27 = vrot.slane %v365_v21, %v374_v20  ;;  %v389_v32 = vrot.slane %v365_v21, %v388_v22  ;;  %v404_v37 = vrot.slane %v365_v21, %v403_v23  ;;  %v411_v38 = vmul.f32 0.75, %v364_v19 }
  0x17   : > { %v419_v39 = vrot.slane %v365_v21, %v418_v26  ;;  %v425_v40 = vmul.f32 0.5, %v363_v18  ;;  %v426_v41 = vmul.f32 0.5, %v364_v19  ;;  %v433_v42 = vsub.s32 4, %v373_v17 }
  0x19   : > { %v434_v6 = vrot.slane %v365_v21, %v433_v42 }
  0xa3   : > { %v344_v7 = vpop.xlane.xlu0 %343 }
  0xa4   : > { %v345_v8 = vrot.slane %v344_v7, 4 }
  0xa6   : > { %v346_v9 = vadd.f32 %v345_v8, %v344_v7 }
  0xa8   : > { %v347_v10 = vrot.slane %v346_v9, 2 }
  0xaa   : > { %v348_v11 = vadd.f32 %v347_v10, %v346_v9 }
  0xac   : > { %v349_v12 = vrot.slane %v348_v11, 1 }
  0xae   : > { %v350_v13 = vadd.f32 %v349_v12, %v348_v11 }
  0xb0   : > { %973 = vpush %v350_v13 }
  0xe1   : > { %s974_s19 = spop %973 }
  0xe2   : > { %s352_s20 = sadd.f32 1e-12, %s974_s19 }
  0xe4   : > { %v353_v14 = vstv %s352_s20 }
  0xe5   : > { %1017 = vrsqrt.f32 %v353_v14 }
  0xef   : > { %v1018_v15 = vpop.eup %1017 }
  0xf0   : > { %975 = vpush %v1018_v15 }
 0x121   : > { %s976_s9 = spop %975 }
 0x122   : > { %v356_v31 = vstv %s976_s9 }
 0x123   : > { %v357_v35 = vmul.f32 %v356_v31, %v335_v0  ;;  %v358_v36 = vmul.f32 %v356_v31, %v336_v1 }
 0x125   : > { %359 = vst.msk [vmem:[#allocation2] sm:$0xff] %vm339_vm0, %v357_v35  ;;  %360 = vst.msk [vmem:[#allocation2 + $0x8] sm:$0xff] %vm339_vm0, %v358_v36  ;;  %v361_v43 = vpack.c.bf16 %v358_v36, %v357_v35  ;;  %v368_v44 = vmul.f32 0.8, %v357_v35  ;;  %v369_v45 = vmul.f32 0.8, %v358_v36 }
 0x126   : > { %v382_v46 = vmul.f32 0.75, %v357_v35  ;;  %v383_v47 = vmul.f32 0.75, %v358_v36  ;;  %v397_v48 = vmul.f32 0.2, %v357_v35  ;;  %v398_v49 = vmul.f32 0.2, %v358_v36 }
 0x127   : > { %v412_v50 = vmul.f32 0.25, %v357_v35  ;;  %362 = vst.msk [vmem:[#allocation4] sm:$0xff] %vm339_vm0, %v361_v43  ;;  %v370_v51 = vadd.f32 %v368_v44, %v366_v24  ;;  %v371_v52 = vadd.f32 %v369_v45, %v367_v25  ;;  %v413_v54 = vmul.f32 0.25, %v358_v36 }
 0x128   : > { %v384_v53 = vadd.f32 %v382_v46, %v380_v28  ;;  %v385_v55 = vadd.f32 %v383_v47, %v381_v29  ;;  %v399_v56 = vadd.f32 %v397_v48, %v395_v30  ;;  %v400_v57 = vadd.f32 %v398_v49, %v396_v33 }
 0x129   : > { %v414_v58 = vadd.f32 %v412_v50, %v410_v34  ;;  %v376_v59 = vmul.f32 %v375_v27, %v370_v51  ;;  %v377_v60 = vmul.f32 %v375_v27, %v371_v52  ;;  %v415_v62 = vadd.f32 %v413_v54, %v411_v38 }
 0x12a   : > { %v390_v61 = vmul.f32 %v389_v32, %v384_v53  ;;  %v391_v63 = vmul.f32 %v389_v32, %v385_v55  ;;  %v405_v0 = vmul.f32 %v404_v37, %v399_v56  ;;  %v406_v1 = vmul.f32 %v404_v37, %v400_v57 }
 0x12b   : > { %v420_v2 = vmul.f32 %v419_v39, %v414_v58  ;;  %378 = vst.msk [vmem:[#allocation5] sm:$0xff] %vm339_vm0, %v376_v59  ;;  %379 = vst.msk [vmem:[#allocation5 + $0x8] sm:$0xff] %vm339_vm0, %v377_v60  ;;  %v421_v3 = vmul.f32 %v419_v39, %v415_v62  ;;  %v427_v4 = vmul.f32 0.5, %v357_v35  ;;  %v428_v5 = vmul.f32 0.5, %v358_v36 }
 0x12c   : > { %393 = vst.msk [vmem:[#allocation5 + $0x10] sm:$0xff] %vm339_vm0, %v390_v61  ;;  %394 = vst.msk [vmem:[#allocation5 + $0x18] sm:$0xff] %vm339_vm0, %v391_v63 }
 0x12d   : > { %408 = vst.msk [vmem:[#allocation5 + $0x20] sm:$0xff] %vm339_vm0, %v405_v0  ;;  %409 = vst.msk [vmem:[#allocation5 + $0x28] sm:$0xff] %vm339_vm0, %v406_v1  ;;  %v429_v7 = vadd.f32 %v427_v4, %v425_v40  ;;  %v430_v8 = vadd.f32 %v428_v5, %v426_v41 }
 0x12e   : > { %423 = vst.msk [vmem:[#allocation5 + $0x30] sm:$0xff] %vm339_vm0, %v420_v2  ;;  %424 = vst.msk [vmem:[#allocation5 + $0x38] sm:$0xff] %vm339_vm0, %v421_v3 }
 0x12f   : > { %v435_v9 = vmul.f32 %v434_v6, %v429_v7  ;;  %v436_v10 = vmul.f32 %v434_v6, %v430_v8 }
 0x131   : > { %438 = vst.msk [vmem:[#allocation5 + $0x40] sm:$0xff] %vm339_vm0, %v435_v9  ;;  %439 = vst.msk [vmem:[#allocation5 + $0x48] sm:$0xff] %vm339_vm0, %v436_v10 }
 0x132 PF: > { %v443_v11 = vld [vmem:[#allocation4] sm:$0xff]  ;;  %v1116_v12 = vmov 0.0   ;;  %vm1117_vm1 = vmmov 0   ;;  %vm449_vm2 = vcmask 130048   ;;  %vm495_vm3 = vcmask 261120   ;;  %v502_v19 = vld [vmem:[#allocation2 + $0x8] sm:$0xff] }
 0x133   : > { %967 = vmatprep.subr.bf16.mxu0 %v1116_v12  ;;  %969 = vmatprep.mubr.msk.bf16.mxu0 %vm1117_vm1, %v1116_v12  ;;  %v1019_v13 = vld [vmem:[%s1394_s4] sm:$0xff]   ;;  %p647_p6 = scmp.eq.s32.totalorder %s1106_s24, 2  ;;  %v561_v53 = vlaneseq  ;;  %v551_v56 = vld [vmem:[%s1186_s11 + $0x8] sm:$0xff] }
 0x134   : > { %968 = vmatpush3.bf16.msra.mxu0 %v443_v11  ;;  %v501_v18 = vld [vmem:[#allocation2] sm:$0xff]  ;;  %v556_v62 = vmul.f32 0.2, %v551_v56  ;;  %v575_v2 = vmul.f32 0.25, %v551_v56  ;;  %v594_v6 = vmul.f32 0.8, %v551_v56 }
 0x135   : > { %v1233_v54 = vshrl.u32 %v561_v53, 7  ;;  %v550_v55 = vld [vmem:[%s1186_s11] sm:$0xff]  ;;  %v613_v11 = vmul.f32 0.75, %v551_v56  ;;  %s1118_s24 = smov (%p647_p6), 32   ;;  %vm676_vm4 = vcmask (%p647_p6), 523520   ;;  %vm854_vm5 = vcmask (%p647_p6), 0  }
 0x136   : > { %v1239_v58 = vld [vmem:[%s1191_s14] sm:$0x1f]  ;;  %v555_v61 = vmul.f32 0.2, %v550_v55  ;;  %v574_v1 = vmul.f32 0.25, %v550_v55  ;;  %v612_v7 = vmul.f32 0.75, %v550_v55 }
 0x137   : > { %970 = vmatmul.mubr.msk.bf16.vlgmr.msra.gmra.mrb[0].mxu0 %vm449_vm2, %v1019_v13  ;;  %v563_v57 = vsub.s32 0, %v1233_v54  ;;  %v582_v59 = vsub.s32 1, %v1233_v54  ;;  %v601_v60 = vsub.s32 2, %v1233_v54  ;;  %v620_v63 = vsub.s32 3, %v1233_v54 }
 0x138   : > { %v593_v3 = vmul.f32 0.8, %v550_v55  ;;  %v631_v13 = vmul.f32 0.5, %v550_v55 }
 0x139   : > { %v564_v0 = vrot.slane %v1239_v58, %v563_v57  ;;  %v583_v5 = vrot.slane %v1239_v58, %v582_v59  ;;  %v602_v10 = vrot.slane %v1239_v58, %v601_v60  ;;  %v621_v12 = vrot.slane %v1239_v58, %v620_v63  ;;  %v629_v63 = vld [vmem:[#allocation5 + $0x40] sm:$0xff] }
 0x20a   : > { %v487_v14 = vpop.f32.mrb[0].mxu0 }
 0x20b   : > { %496 = vst.msk [vmem:[#allocation3] sm:$0xff] %vm495_vm3, %v487_v14  ;;  %v971_v15 = vpop.f32.mrb[1].mxu0  ;;  %v632_v14 = vmul.f32 0.5, %v551_v56 }
 0x20c   : > { %v490_v16 = vpop.f32.mrb[2].mxu0  ;;  %v639_v15 = vsub.s32 4, %v1233_v54 }
 0x20d   : > { %497 = vst.msk [vmem:[#allocation3 + $0x8] sm:$0xff] %vm495_vm3, %v490_v16  ;;  %v972_v17 = vpop.f32.mrb[3].mxu0 }
 0x20e   : > { %v640_v60 = vrot.slane %v1239_v58, %v639_v15 }
 0x212   : > { %v503_v20 = vld [vmem:[#allocation3] sm:$0xff] }
 0x213   : > { %v505_v21 = vmul.f32 %v503_v20, %v501_v18 }
 0x214   : > { %v504_v22 = vld [vmem:[#allocation3 + $0x8] sm:$0xff] }
 0x215   : > { %v506_v23 = vmul.f32 %v504_v22, %v502_v19  ;;  %v507_v24 = vsel %vm495_vm3, %v505_v21, 0.0 }
 0x217   : > { %v508_v25 = vsel %vm495_vm3, %v506_v23, 0.0 }
 0x218   : > { %v509_v26 = vadd.f32 %v508_v25, %v507_v24  ;;  %v553_v24 = vld [vmem:[#allocation5] sm:$0xff] }
 0x21a   : > { %510 = vadd.xlane.f32.xlu0 %v509_v26 }
 0x2a7   : > { %v511_v27 = vpop.xlane.xlu0 %510 }
 0x2a8   : > { %v512_v28 = vrot.slane %v511_v27, 4 }
 0x2aa   : > { %v513_v29 = vadd.f32 %v512_v28, %v511_v27 }
 0x2ac   : > { %v514_v30 = vrot.slane %v513_v29, 2 }
 0x2ae   : > { %v515_v31 = vadd.f32 %v514_v30, %v513_v29  ;;  %v554_v29 = vld [vmem:[#allocation5 + $0x8] sm:$0xff]  ;;  %v572_v30 = vld [vmem:[#allocation5 + $0x10] sm:$0xff] }
 0x2b0   : > { %v516_v32 = vrot.slane %v515_v31, 1 }
 0x2b2   : > { %v517_v33 = vadd.f32 %v516_v32, %v515_v31  ;;  %v573_v31 = vld [vmem:[#allocation5 + $0x18] sm:$0xff] }
 0x2b4   : > { %977 = vpush %v517_v33 }
 0x2e5   : > { %s978_s13 = spop %977 }
 0x2e6   : > { %s519_s15 = smul.f32 0.5, %s978_s13 }
 0x2e8   : > { %v520_v34 = vstv %s519_s15 }
 0x2e9   : > { %v521_v35 = vmul.f32 %v520_v34, %v501_v18  ;;  %v522_v36 = vmul.f32 %v520_v34, %v502_v19 }
 0x2eb   : > { %v523_v37 = vsub.f32 %v503_v20, %v521_v35  ;;  %v524_v38 = vsub.f32 %v504_v22, %v522_v36 }
 0x2ed   : > { %v525_v39 = vmul.f32 %v523_v37, %v523_v37  ;;  %v526_v40 = vmul.f32 %v524_v38, %v524_v38 }
 0x2ef   : > { %v527_v41 = vsel %vm495_vm3, %v525_v39, 0.0  ;;  %v528_v42 = vsel %vm495_vm3, %v526_v40, 0.0  ;;  %v591_v39 = vld [vmem:[#allocation5 + $0x20] sm:$0xff]  ;;  %v592_v40 = vld [vmem:[#allocation5 + $0x28] sm:$0xff] }
 0x2f0   : > { %v529_v43 = vadd.f32 %v528_v42, %v527_v41  ;;  %v610_v41 = vld [vmem:[#allocation5 + $0x30] sm:$0xff] }
 0x2f2   : > { %530 = vadd.xlane.f32.xlu0 %v529_v43 }
 0x37f   : > { %v531_v44 = vpop.xlane.xlu0 %530 }
 0x380   : > { %v532_v45 = vrot.slane %v531_v44, 4 }
 0x382   : > { %v533_v46 = vadd.f32 %v532_v45, %v531_v44 }
 0x384   : > { %v534_v47 = vrot.slane %v533_v46, 2 }
 0x386   : > { %v535_v48 = vadd.f32 %v534_v47, %v533_v46  ;;  %v611_v46 = vld [vmem:[#allocation5 + $0x38] sm:$0xff] }
 0x388   : > { %v536_v49 = vrot.slane %v535_v48, 1 }
 0x38a   : > { %v537_v50 = vadd.f32 %v536_v49, %v535_v48 }
 0x38c   : > { %979 = vpush %v537_v50 }
 0x3bd   : > { %s980_s16 = spop %979 }
 0x3be   : > { %s539_s17 = sadd.f32 1e-12, %s980_s16 }
 0x3c0   : > { %v540_v51 = vstv %s539_s17 }
 0x3c1   : > { %1020 = vrsqrt.f32 %v540_v51 }
 0x3cb   : > { %v1021_v52 = vpop.eup %1020 }
 0x3cc   : > { %981 = vpush %v1021_v52 }
 0x3fd   : > { %s982_s18 = spop %981 }
 0x3fe   : > { %v543_v4 = vstv %s982_s18 }
 0x3ff   : > { %v544_v8 = vmul.f32 %v543_v4, %v523_v37  ;;  %v545_v9 = vmul.f32 %v543_v4, %v524_v38 }
 0x401   : > { %546 = vst.msk [vmem:[#allocation2] sm:$0xff] %vm495_vm3, %v544_v8  ;;  %547 = vst.msk [vmem:[#allocation2 + $0x8] sm:$0xff] %vm495_vm3, %v545_v9  ;;  %v548_v16 = vpack.c.bf16 %v545_v9, %v544_v8  ;;  %v557_v17 = vmul.f32 0.8, %v544_v8  ;;  %v558_v18 = vmul.f32 0.8, %v545_v9 }
 0x402   : > { %v576_v19 = vmul.f32 0.75, %v544_v8  ;;  %v577_v20 = vmul.f32 0.75, %v545_v9  ;;  %v595_v21 = vmul.f32 0.2, %v544_v8  ;;  %v596_v22 = vmul.f32 0.2, %v545_v9 }
 0x403   : > { %v614_v23 = vmul.f32 0.25, %v544_v8  ;;  %549 = vst.msk [vmem:[#allocation4] sm:$0xff] %vm495_vm3, %v548_v16  ;;  %v559_v25 = vadd.f32 %v557_v17, %v555_v61  ;;  %v560_v26 = vadd.f32 %v558_v18, %v556_v62  ;;  %v615_v28 = vmul.f32 0.25, %v545_v9 }
 0x404   : > { %v578_v27 = vadd.f32 %v576_v19, %v574_v1  ;;  %v579_v32 = vadd.f32 %v577_v20, %v575_v2  ;;  %v597_v33 = vadd.f32 %v595_v21, %v593_v3  ;;  %v598_v34 = vadd.f32 %v596_v22, %v594_v6 }
 0x405   : > { %v616_v35 = vadd.f32 %v614_v23, %v612_v7  ;;  %v565_v36 = vmul.f32 %v564_v0, %v559_v25  ;;  %v566_v37 = vmul.f32 %v564_v0, %v560_v26  ;;  %v617_v42 = vadd.f32 %v615_v28, %v613_v11  ;;  %v630_v0 = vld [vmem:[#allocation5 + $0x48] sm:$0xff] }
 0x406   : > { %v584_v38 = vmul.f32 %v583_v5, %v578_v27  ;;  %v585_v43 = vmul.f32 %v583_v5, %v579_v32  ;;  %v603_v44 = vmul.f32 %v602_v10, %v597_v33  ;;  %v604_v45 = vmul.f32 %v602_v10, %v598_v34 }
 0x407   : > { %v622_v47 = vmul.f32 %v621_v12, %v616_v35  ;;  %v567_v48 = vadd.f32 %v565_v36, %v553_v24  ;;  %v568_v49 = vadd.f32 %v566_v37, %v554_v29  ;;  %v623_v51 = vmul.f32 %v621_v12, %v617_v42 }
 0x408   : > { %v586_v50 = vadd.f32 %v584_v38, %v572_v30  ;;  %v587_v52 = vadd.f32 %v585_v43, %v573_v31  ;;  %v605_v53 = vadd.f32 %v603_v44, %v591_v39  ;;  %v606_v54 = vadd.f32 %v604_v45, %v592_v40 }
 0x409   : > { %v624_v55 = vadd.f32 %v622_v47, %v610_v41  ;;  %569 = vst.msk [vmem:[#allocation5] sm:$0xff] %vm495_vm3, %v567_v48  ;;  %570 = vst.msk [vmem:[#allocation5 + $0x8] sm:$0xff] %vm495_vm3, %v568_v49  ;;  %v625_v56 = vadd.f32 %v623_v51, %v611_v46  ;;  %v633_v57 = vmul.f32 0.5, %v544_v8  ;;  %v634_v59 = vmul.f32 0.5, %v545_v9 }
 0x40a   : > { %588 = vst.msk [vmem:[#allocation5 + $0x10] sm:$0xff] %vm495_vm3, %v586_v50  ;;  %589 = vst.msk [vmem:[#allocation5 + $0x18] sm:$0xff] %vm495_vm3, %v587_v52 }
 0x40b   : > { %607 = vst.msk [vmem:[#allocation5 + $0x20] sm:$0xff] %vm495_vm3, %v605_v53  ;;  %608 = vst.msk [vmem:[#allocation5 + $0x28] sm:$0xff] %vm495_vm3, %v606_v54  ;;  %v635_v61 = vadd.f32 %v633_v57, %v631_v13  ;;  %v636_v62 = vadd.f32 %v634_v59, %v632_v14  ;;  %651 = sbr.rel (!%p647_p6) target bundleno = 1280 (0x500), region = 56 }
 0x40c   : > { %626 = vst.msk [vmem:[#allocation5 + $0x30] sm:$0xff] %vm495_vm3, %v624_v55  ;;  %627 = vst.msk [vmem:[#allocation5 + $0x38] sm:$0xff] %vm495_vm3, %v625_v56 }
 0x40d   : > { %v641_v1 = vmul.f32 %v640_v60, %v635_v61  ;;  %v642_v2 = vmul.f32 %v640_v60, %v636_v62 }
 0x40f   : > { %v643_v3 = vadd.f32 %v641_v1, %v629_v63  ;;  %v644_v4 = vadd.f32 %v642_v2, %v630_v0 }
 0x410   : > { %v652_v58 = vld [vmem:[#allocation5] sm:$0xff] (%p647_p6)  ;;  %v653_v9 = vld [vmem:[#allocation5 + $0x8] sm:$0xff] (%p647_p6) }
 0x411   : > { %645 = vst.msk [vmem:[#allocation5 + $0x40] sm:$0xff] %vm495_vm3, %v643_v3  ;;  %646 = vst.msk [vmem:[#allocation5 + $0x48] sm:$0xff] %vm495_vm3, %v644_v4  ;;  %v655_v6 = vld [vmem:[#allocation5 + $0x10] sm:$0xff] (%p647_p6)  ;;  %v656_v11 = vld [vmem:[#allocation5 + $0x18] sm:$0xff] (%p647_p6) }
 0x412   : > { %v658_v5 = vld [vmem:[#allocation5 + $0x20] sm:$0xff]  ;;  %666 = vst.msk [vmem:[%s1396_s6] sm:$0xff] %vm495_vm3, %v652_v58  ;;  %v679_v8 = vmul.f32 %v655_v6, %v652_v58  ;;  %v659_v10 = vld [vmem:[#allocation5 + $0x28] sm:$0xff]  ;;  %667 = vst.msk [vmem:[%s1396_s6 + $0x8] sm:$0xff] %vm495_vm3, %v653_v9  ;;  %v680_v13 = vmul.f32 %v656_v11, %v653_v9 }
 0x413   : > { %v689_v7 = vmul.f32 %v658_v5, %v652_v58  ;;  %v690_v12 = vmul.f32 %v659_v10, %v653_v9  ;;  %v662_v14 = vld [vmem:[#allocation5 + $0x38] sm:$0xff]  ;;  %v661_v15 = vld [vmem:[#allocation5 + $0x30] sm:$0xff]  ;;  %v782_v34 = vmul.f32 %v659_v10, %v656_v11  ;;  %v781_v35 = vmul.f32 %v658_v5, %v655_v6 }
 0x414   : > { %v681_v17 = vsel %vm495_vm3, %v679_v8, 0.0  ;;  %v684_v19 = vsel %vm495_vm3, %v680_v13, 0.0  ;;  %v700_v20 = vmul.f32 %v662_v14, %v653_v9  ;;  %v699_v21 = vmul.f32 %v661_v15, %v652_v58 }
 0x415   : > { %v691_v16 = vsel %vm495_vm3, %v689_v7, 0.0  ;;  %682 = vadd.xlane.f32.xlu0 %v681_v17  ;;  %v694_v18 = vsel %vm495_vm3, %v690_v12, 0.0  ;;  %v772_v30 = vmul.f32 %v662_v14, %v659_v10  ;;  %v771_v31 = vmul.f32 %v661_v15, %v658_v5 }
 0x416   : > { %692 = vadd.xlane.f32.xlu1 %v691_v16  ;;  %v704_v24 = vsel %vm495_vm3, %v700_v20, 0.0  ;;  %v701_v25 = vsel %vm495_vm3, %v699_v21, 0.0  ;;  %v786_v36 = vsel %vm495_vm3, %v782_v34, 0.0  ;;  %v783_v37 = vsel %vm495_vm3, %v781_v35, 0.0 }
 0x417   : > { %v776_v32 = vsel %vm495_vm3, %v772_v30, 0.0  ;;  %v773_v33 = vsel %vm495_vm3, %v771_v31, 0.0 }
 0x418   : > { %v665_v22 = vld [vmem:[#allocation5 + $0x48] sm:$0xff]  ;;  %v664_v23 = vld [vmem:[#allocation5 + $0x40] sm:$0xff] }
 0x419   : > { %685 = vadd.xlane.f32.xlu0 %v684_v19  ;;  %v710_v26 = vmul.f32 %v665_v22, %v653_v9  ;;  %v709_v27 = vmul.f32 %v664_v23, %v652_v58  ;;  %v792_v38 = vmul.f32 %v665_v22, %v659_v10  ;;  %v791_v39 = vmul.f32 %v664_v23, %v658_v5 }
 0x41a   : > { %695 = vadd.xlane.f32.xlu1 %v694_v18 }
 0x41b   : > { %v714_v28 = vsel %vm495_vm3, %v710_v26, 0.0  ;;  %v711_v29 = vsel %vm495_vm3, %v709_v27, 0.0  ;;  %v796_v40 = vsel %vm495_vm3, %v792_v38, 0.0  ;;  %v793_v41 = vsel %vm495_vm3, %v791_v39, 0.0 }
 0x41d   : > { %702 = vadd.xlane.f32.xlu0 %v701_v25 }
 0x41e   : > { %705 = vadd.xlane.f32.xlu1 %v704_v24 }
 0x421   : > { %712 = vadd.xlane.f32.xlu0 %v711_v29 }
 0x422   : > { %715 = vadd.xlane.f32.xlu1 %v714_v28 }
 0x425   : > { %774 = vadd.xlane.f32.xlu0 %v773_v33 }
 0x426   : > { %777 = vadd.xlane.f32.xlu1 %v776_v32 }
 0x429   : > { %784 = vadd.xlane.f32.xlu0 %v783_v37 }
 0x42a   : > { %787 = vadd.xlane.f32.xlu1 %v786_v36 }
 0x42d   : > { %794 = vadd.xlane.f32.xlu0 %v793_v41 }
 0x42e   : > { %797 = vadd.xlane.f32.xlu1 %v796_v40 }
 0x43f   : > { %672 = vrot.lane.b32.xlu1 %v659_v10, %s1118_s24 }
 0x443   : > { %670 = vrot.lane.b32.xlu0 %v658_v5, %s1118_s24 }
 0x4a2   : > { %v683_v43 = vpop.xlane.xlu0 %682 }
 0x4a3   : > { %v693_v42 = vpop.xlane.xlu1 %692  ;;  %v1289_v49 = vmul.f32 10.0, %v683_v43 }
 0x4a4   : > { %v1287_v48 = vmul.f32 10.0, %v693_v42 }
 0x4a6   : > { %v686_v45 = vpop.xlane.xlu0 %685  ;;  %v719_v59 = vmax.f32 %v1289_v49, %v1287_v48 }
 0x4a7   : > { %v696_v44 = vpop.xlane.xlu1 %695  ;;  %v1293_v51 = vmul.f32 10.0, %v686_v45 }
 0x4a8   : > { %v1291_v50 = vmul.f32 10.0, %v696_v44 }
 0x4aa   : > { %v703_v47 = vpop.xlane.xlu0 %702  ;;  %v720_v60 = vmax.f32 %v1293_v51, %v1291_v50 }
 0x4ab   : > { %v706_v46 = vpop.xlane.xlu1 %705  ;;  %v707_v55 = vmul.f32 10.0, %v703_v47 }
 0x4ac   : > { %v708_v54 = vmul.f32 10.0, %v706_v46 }
 0x4ae   : > { %v713_v53 = vpop.xlane.xlu0 %712 }
 0x4af   : > { %v716_v52 = vpop.xlane.xlu1 %715  ;;  %v717_v57 = vmul.f32 10.0, %v713_v53 }
 0x4b0   : > { %v718_v56 = vmul.f32 10.0, %v716_v52 }
 0x4b1   : > { %v721_v62 = vmax.f32 %v707_v55, %v717_v57 }
 0x4b2   : > { %v722_v61 = vmax.f32 %v708_v54, %v718_v56  ;;  %v775_v0 = vpop.xlane.xlu0 %774 }
 0x4b3   : > { %v778_v63 = vpop.xlane.xlu1 %777  ;;  %v1301_v2 = vmax.f32 %v719_v59, %v721_v62  ;;  %v1316_v17 = vmul.f32 10.0, %v775_v0 }
 0x4b4   : > { %v1299_v1 = vmax.f32 %v720_v60, %v722_v61  ;;  %v1314_v15 = vmul.f32 10.0, %v778_v63 }
 0x4b5   : > { %v725_v6 = vsub.f32 %v1289_v49, %v1301_v2  ;;  %v731_v7 = vsub.f32 %v1287_v48, %v1301_v2  ;;  %v739_v14 = vsub.f32 %v707_v55, %v1301_v2  ;;  %v747_v19 = vsub.f32 %v717_v57, %v1301_v2 }
 0x4b6   : > { %v726_v3 = vsub.f32 %v1293_v51, %v1299_v1  ;;  %v732_v4 = vsub.f32 %v1291_v50, %v1299_v1  ;;  %v740_v58 = vsub.f32 %v708_v54, %v1299_v1  ;;  %v748_v5 = vsub.f32 %v718_v56, %v1299_v1  ;;  %v785_v9 = vpop.xlane.xlu0 %784 }
 0x4b7   : > { %v788_v8 = vpop.xlane.xlu1 %787  ;;  %v727_v16 = vmul.f32 1.442695, %v725_v6  ;;  %v733_v18 = vmul.f32 1.442695, %v731_v7  ;;  %v789_v23 = vmul.f32 10.0, %v785_v9  ;;  %v802_v27 = vmax.f32 %v1314_v15, %v1291_v50 }
 0x4b8   : > { %v729_v10 = vmul.f32 1.442695, %v726_v3  ;;  %v735_v11 = vmul.f32 1.442695, %v732_v4  ;;  %v743_v12 = vmul.f32 1.442695, %v740_v58  ;;  %v801_v28 = vmax.f32 %v1316_v17, %v1287_v48 }
 0x4b9   : > { %v751_v13 = vmul.f32 1.442695, %v748_v5  ;;  %v790_v20 = vmul.f32 10.0, %v788_v8  ;;  %v741_v26 = vmul.f32 1.442695, %v739_v14 }
 0x4ba   : > { %1022 = vpow2.f32 %v729_v10  ;;  %v795_v22 = vpop.xlane.xlu0 %794  ;;  %v749_v31 = vmul.f32 1.442695, %v747_v19 }
 0x4bb   : > { %1024 = vpow2.f32 %v735_v11  ;;  %v798_v21 = vpop.xlane.xlu1 %797  ;;  %v799_v25 = vmul.f32 10.0, %v795_v22 }
 0x4bc   : > { %1026 = vpow2.f32 %v743_v12  ;;  %v800_v24 = vmul.f32 10.0, %v798_v21 }
 0x4bd   : > { %1028 = vpow2.f32 %v751_v13  ;;  %v803_v30 = vmax.f32 %v789_v23, %v799_v25 }
 0x4be   : > { %1030 = vpow2.f32 %v727_v16  ;;  %v804_v29 = vmax.f32 %v790_v20, %v800_v24  ;;  %v671_v33 = vpop.permute.xlu0 %670 }
 0x4bf   : > { %1032 = vpow2.f32 %v733_v18  ;;  %v673_v32 = vpop.permute.xlu1 %672  ;;  %v1325_v35 = vmax.f32 %v801_v28, %v803_v30  ;;  %677 = vst.msk [vmem:[%s1396_s6] sm:$0xff] %vm676_vm4, %v671_v33 }
 0x4c0   : > { %v1323_v34 = vmax.f32 %v802_v27, %v804_v29  ;;  %678 = vst.msk [vmem:[%s1396_s6 + $0x8] sm:$0xff] %vm676_vm4, %v673_v32  ;;  %1034 = vpow2.f32 %v741_v26 }
 0x4c1   : > { %1036 = vpow2.f32 %v749_v31  ;;  %v807_v40 = vsub.f32 %v1316_v17, %v1325_v35  ;;  %v813_v41 = vsub.f32 %v1287_v48, %v1325_v35  ;;  %v821_v52 = vsub.f32 %v789_v23, %v1325_v35 }
 0x4c2   : > { %v808_v36 = vsub.f32 %v1314_v15, %v1323_v34  ;;  %v814_v37 = vsub.f32 %v1291_v50, %v1323_v34  ;;  %v822_v38 = vsub.f32 %v790_v20, %v1323_v34  ;;  %v830_v39 = vsub.f32 %v800_v24, %v1323_v34 }
 0x4c3   : > { %v809_v54 = vmul.f32 1.442695, %v807_v40  ;;  %v815_v56 = vmul.f32 1.442695, %v813_v41  ;;  %v829_v57 = vsub.f32 %v799_v25, %v1325_v35  ;;  %v823_v61 = vmul.f32 1.442695, %v821_v52 }
 0x4c4   : > { %v1023_v42 = vpop.eup %1022  ;;  %v811_v43 = vmul.f32 1.442695, %v808_v36  ;;  %v817_v44 = vmul.f32 1.442695, %v814_v37  ;;  %v825_v45 = vmul.f32 1.442695, %v822_v38 }
 0x4c5   : > { %v1025_v46 = vpop.eup %1024  ;;  %v833_v47 = vmul.f32 1.442695, %v830_v39  ;;  %v831_v3 = vmul.f32 1.442695, %v829_v57 }
 0x4c6   : > { %v1027_v50 = vpop.eup %1026  ;;  %v738_v53 = vadd.f32 %v1025_v46, %v1023_v42  ;;  %1038 = vpow2.f32 %v811_v43 }
 0x4c7   : > { %v1029_v55 = vpop.eup %1028  ;;  %1040 = vpow2.f32 %v817_v44 }
 0x4c8   : > { %v1031_v59 = vpop.eup %1030  ;;  %v746_v60 = vadd.f32 %v1027_v50, %v738_v53  ;;  %1042 = vpow2.f32 %v825_v45 }
 0x4c9   : > { %v1033_v48 = vpop.eup %1032  ;;  %1044 = vpow2.f32 %v833_v47 }
 0x4ca   : > { %v754_v62 = vadd.f32 %v1029_v55, %v746_v60  ;;  %v737_v63 = vadd.f32 %v1033_v48, %v1031_v59  ;;  %1046 = vpow2.f32 %v809_v54  ;;  %v1035_v0 = vpop.eup %1034 }
 0x4cb   : > { %1048 = vpow2.f32 %v815_v56  ;;  %v1037_v58 = vpop.eup %1036 }
 0x4cc   : > { %1050 = vlog2.f32 %v754_v62  ;;  %v745_v4 = vadd.f32 %v1035_v0, %v737_v63 }
 0x4cd   : > { %1052 = vpow2.f32 %v823_v61 }
 0x4ce   : > { %v753_v5 = vadd.f32 %v1037_v58, %v745_v4  ;;  %1054 = vpow2.f32 %v831_v3 }
 0x4d0   : > { %v1039_v6 = vpop.eup %1038  ;;  %1056 = vlog2.f32 %v753_v5 }
 0x4d1   : > { %v1041_v7 = vpop.eup %1040 }
 0x4d2   : > { %v1043_v8 = vpop.eup %1042  ;;  %v820_v9 = vadd.f32 %v1041_v7, %v1039_v6 }
 0x4d3   : > { %v1045_v10 = vpop.eup %1044 }
 0x4d4   : > { %v1047_v11 = vpop.eup %1046  ;;  %v828_v12 = vadd.f32 %v1043_v8, %v820_v9 }
 0x4d5   : > { %v1049_v13 = vpop.eup %1048 }
 0x4d6   : > { %v1051_v14 = vpop.eup %1050  ;;  %v836_v16 = vadd.f32 %v1045_v10, %v828_v12  ;;  %v819_v18 = vadd.f32 %v1049_v13, %v1047_v11 }
 0x4d7   : > { %v1053_v19 = vpop.eup %1052  ;;  %v758_v20 = vmul.f32 0.6931472, %v1051_v14 }
 0x4d8   : > { %1058 = vlog2.f32 %v836_v16  ;;  %v827_v21 = vadd.f32 %v1053_v19, %v819_v18  ;;  %v1055_v22 = vpop.eup %1054 }
 0x4d9   : > { %v760_v23 = vadd.f32 %v758_v20, %v1299_v1 }
 0x4da   : > { %v1057_v24 = vpop.eup %1056  ;;  %v835_v25 = vadd.f32 %v1055_v22, %v827_v21 }
 0x4db   : > { %v756_v26 = vmul.f32 0.6931472, %v1057_v24  ;;  %v762_v27 = vsub.f32 %v760_v23, %v1293_v51 }
 0x4dc   : > { %1060 = vlog2.f32 %v835_v25 }
 0x4dd   : > { %v759_v28 = vadd.f32 %v756_v26, %v1301_v2 }
 0x4df   : > { %v761_v29 = vsub.f32 %v759_v28, %v1289_v49 }
 0x4e1   : > { %v763_v30 = vadd.f32 %v762_v27, %v761_v29 }
 0x4e2   : > { %v1059_v31 = vpop.eup %1058 }
 0x4e3   : > { %v764_v32 = vrot.slane %v763_v30, 4  ;;  %v840_v33 = vmul.f32 0.6931472, %v1059_v31 }
 0x4e5   : > { %v842_v36 = vadd.f32 %v840_v33, %v1323_v34  ;;  %v765_v38 = vadd.f32 %v764_v32, %v763_v30 }
 0x4e6   : > { %v1061_v37 = vpop.eup %1060 }
 0x4e7   : > { %v838_v39 = vmul.f32 0.6931472, %v1061_v37  ;;  %v844_v1 = vsub.f32 %v842_v36, %v1314_v15  ;;  %v766_v41 = vrot.slane %v765_v38, 2 }
 0x4e9   : > { %v841_v40 = vadd.f32 %v838_v39, %v1325_v35  ;;  %v767_v2 = vadd.f32 %v766_v41, %v765_v38 }
 0x4eb   : > { %v843_v51 = vsub.f32 %v841_v40, %v1316_v17  ;;  %v768_v44 = vrot.slane %v767_v2, 1 }
 0x4ed   : > { %v845_v42 = vadd.f32 %v844_v1, %v843_v51  ;;  %v769_v47 = vadd.f32 %v768_v44, %v767_v2 }
 0x4ef   : > { %v846_v43 = vrot.slane %v845_v42, 4  ;;  %v770_v50 = vmul.f32 0.0625, %v769_v47 }
 0x4f1   : > { %v847_v49 = vadd.f32 %v846_v43, %v845_v42 }
 0x4f3   : > { %v848_v45 = vrot.slane %v847_v49, 2 }
 0x4f5   : > { %v849_v46 = vadd.f32 %v848_v45, %v847_v49 }
 0x4f7   : > { %v850_v52 = vrot.slane %v849_v46, 1 }
 0x4f9   : > { %v851_v34 = vadd.f32 %v850_v52, %v849_v46 }
 0x4fb   : > { %v852_v53 = vmul.f32 0.0625, %v851_v34 }
 0x4fd   : > { %v853_v54 = vadd.f32 %v852_v53, %v770_v50 }
 0x4ff   : > { %855 = vst.msk [vmem:[#allocation6] sm:$0x1] %vm854_vm5, %v853_v54 }
 0x500 PF: > { %p1355_p7 = scmp.eq.s32.totalorder %s946_s27, 2  ;;  %s1119_s8 = smov [#allocation6]  }
 0x501   : > { %s866_s9 = sshll.u32 %s1119_s8, 4  ;;  %s867_s9 = int_to_ptr.vmem [resolvable:$true] %s866_s9 }
 0x502   : > { %s1062_s10 = scalar_lea.vmem %s867_s9, 16  ;;  %s1068_s12 = scalar_lea.vmem %s867_s9, 32 }
 0x503   : > { %p1063_p8 = scmp.ne.s32.totalorder %s867_s9, %s1062_s10  ;;  %p1069_p11 = scmp.lt.s32.totalorder %s867_s9, %s867_s9 }
 0x504   : > { %p1070_p12 = scmp.lt.s32.totalorder %s1068_s12, %s1062_s10 }
 0x505   : > { %p1064_p9 = pnand %p1063_p8, %p1355_p7 }
 0x506   : > { %p1071_p13 = por %p1070_p12, %p1069_p11 }
 0x507   : > { %p1065_p10 = pneg %p1064_p9 }
 0x509   : > { %p1072_p0 = pnand %p1071_p13, %p1065_p10 }
 0x50b   : > { %1075 = shalt.err (!%p1072_p0)
}
 0x50c   : > { %s1076_s15 = scalar_lea.hbm %s1397_s7, 16 }
 0x50d   : > { %p1077_p1 = scmp.ne.s32.totalorder %s1397_s7, %s1076_s15  ;;  %p1082_p4 = scmp.lt.u32.totalorder %s1076_s15, %s1397_s7 }
 0x50f   : > { %p1078_p2 = pnand %p1077_p1, %p1355_p7 }
 0x511   : > { %p1079_p3 = pneg %p1078_p2 }
 0x513   : > { %p1084_p5 = pnand %p1082_p4, %p1079_p3 }
 0x515   : > { %1087 = shalt.err (!%p1084_p5)
}
 0x516   : > { %984 = dma.vmem_to_hbm [thread:$0]  (%p1355_p7), %s867_s9, 16, %s1397_s7, [#allocation7]  }
 0x517   : > { %1101 = dma.done.wait (%p1355_p7), [#allocation7], 16  }
 0x518   : > { %1103 = vsyncadd (%p1355_p7), [#allocation7], 4294967280 }
 0x519 PF: > { %s19_s26 = sadd.s32 1, %s1114_s26   ;;  %s1399_s24 = smov %s1110_s25 }
 0x51a   : > { %p16_p6 = scmp.ge.s32.totalorder %s19_s26, 5   ;;  %s1400_s25 = smov %s1402_s28 }
 0x51c   :  { %18 = sbr.rel (!%p16_p6) target bundleno = 2 (0x2), region = 110 }
 0x523   :  { %882 = vsyncpa [#allocation7], 1 }
 0x524   :  { %884 = vsyncpa [#allocation7 + $0x1], 1 }

</bundles_post_ra>
